<compile_context>
chip_gen: v7x
topology: tpu7x:2x2x1
jax: 0.10.0
libtpu: 0.0.40
codegen_flags: <defaults>
</compile_context>

<pallas_src>
import functools

import jax
import jax.numpy as jnp
from jax.experimental import pallas as pl
from jax.experimental.pallas import tpu as pltpu


def _round_up(a: int, b: int) -> int:
    return (a + b - 1) // b * b


def _patchify_kernel(t_ref, w_ref, b_ref, o_ref):
    # t_ref: (TR, KP)  packed tokens: G tokens of length P per row (+ zero pad)
    # w_ref: (KP, GE)  block-diagonal weight kron(I_G, W.T) (+ zero pad rows)
    # b_ref: (1, GE)   bias tiled G times, f32
    # o_ref: (TR, GE)  lane-dense output (GE == 128 for the default E == 32)
    acc = jnp.dot(t_ref[...], w_ref[...], preferred_element_type=jnp.float32)
    o_ref[...] = (acc + b_ref[...]).astype(o_ref.dtype)


def patchify_vect(x, weight, bias, *, patch_size, tile_rows=1024):
    """Pallas forward of PatchifyVect.

    x:      (B, C, L) with C == 1 (the original module only works for C == 1)
    weight: (E, C * patch_size)   nn.Linear weight
    bias:   (E,)                  nn.Linear bias
    returns (B, L // patch_size, E)
    """
    B, C, L = x.shape
    assert C == 1, "original module only works for channels_in == 1"
    P = patch_size
    N = L // P
    E = weight.shape[0]
    M = B * N                              # flattened token axis

    # Pack G tokens per row so output rows are (close to) 128 lanes wide.
    G = 128 // E if (E <= 128 and 128 % E == 0) else 1
    GP, GE = G * P, G * E
    KP = _round_up(GP, 8)                  # sublane-align the contraction dim

    R = pl.cdiv(M, G)                      # packed rows needed
    # >= 2 grid steps when there is enough work (keeps v7x's 2nd TC busy);
    # cap rows per step at tile_rows for large M.
    steps = max(2, pl.cdiv(R, tile_rows)) if R >= 16 else 1
    TR = _round_up(pl.cdiv(R, steps), 8)
    Rp = TR * steps
    Mp = Rp * G

    # --- wrapper glue: one fused pass builds the packed token slab ----------
    tokens = x[:, 0, : N * P].reshape(M, P)                       # unfold
    packed = jnp.pad(tokens, ((0, Mp - M), (0, 0))).reshape(Rp, GP)
    if KP > GP:
        packed = jnp.pad(packed, ((0, 0), (0, KP - GP)))          # (Rp, KP)

    # Block-diagonal weight: MXU emits the packed lane-dense layout directly.
    w_bd = jnp.kron(jnp.eye(G, dtype=weight.dtype), weight.T)     # (GP, GE)
    if KP > GP:
        w_bd = jnp.pad(w_bd, ((0, KP - GP), (0, 0)))
    w_bd = w_bd.astype(x.dtype)                                   # (KP, GE)
    b_bd = jnp.tile(bias.astype(jnp.float32), G).reshape(1, GE)   # f32 bias

    itemsize = jnp.dtype(x.dtype).itemsize
    cost = pl.CostEstimate(
        flops=2 * Rp * KP * GE,
        transcendentals=0,
        bytes_accessed=(Rp * KP + KP * GE + Rp * GE) * itemsize + GE * 4,
    )

    out = pl.pallas_call(
        _patchify_kernel,
        out_shape=jax.ShapeDtypeStruct((Rp, GE), x.dtype),
        grid=(steps,),
        in_specs=[
            pl.BlockSpec((TR, KP), lambda i: (i, 0)),
            pl.BlockSpec((KP, GE), lambda i: (0, 0)),
            pl.BlockSpec((1, GE), lambda i: (0, 0)),
        ],
        out_specs=pl.BlockSpec((TR, GE), lambda i: (i, 0)),
        compiler_params=pltpu.CompilerParams(
            dimension_semantics=("parallel",),
            vmem_limit_bytes=32 * 1024 * 1024,
        ),
        cost_estimate=cost,
    )(packed, w_bd, b_bd)

    # (Rp, G*E) row-major == (Mp, E); drop pad rows (copy only when Mp > M).
    out = out.reshape(Mp, E)
    if Mp > M:
        out = out[:M]
    return out.reshape(B, N, E)


if __name__ == "__main__":
    # Module defaults: channels_in=1, L=2278, patch_size=7, embed_dim=32; B=2.
    B, C, L, P, E = 2, 1, 2278, 7, 32
    N = L // P                            # 325 (remainder 3 dropped, as in unfold)

    key = jax.random.PRNGKey(0)
    kx, kw, kb = jax.random.split(key, 3)
    x = jax.random.normal(kx, (B, C, L), dtype=jnp.float32)
    bound = 1.0 / jnp.sqrt(C * P)
    weight = jax.random.uniform(kw, (E, C * P), minval=-bound, maxval=bound,
                                dtype=jnp.float32)
    bias = jax.random.uniform(kb, (E,), minval=-bound, maxval=bound,
                              dtype=jnp.float32)

    fwd = jax.jit(functools.partial(patchify_vect, patch_size=P))
    out = jax.block_until_ready(fwd(x, weight, bias))

    # Plain-JAX reference of the exact forward semantics.
    ref = x[:, 0, : N * P].reshape(B, N, P) @ weight.T + bias
    assert out.shape == (B, N, E)
    assert jnp.allclose(out, ref, atol=1e-5, rtol=1e-5)

    print("KERNEL_OK")
</pallas_src>

<mosaic_0001>
module attributes {stable_mosaic.version = 11 : i64} {
  func.func @_patchify_kernel(%arg0: i32, %arg1: memref<88x32xf32, #tpu.memory_space<vmem>>, %arg2: memref<32x128xf32, #tpu.memory_space<vmem>>, %arg3: memref<1x128xf32, #tpu.memory_space<vmem>>, %arg4: memref<88x128xf32, #tpu.memory_space<vmem>>) attributes {dimension_semantics = [#tpu.dimension_semantics<parallel>], iteration_bounds = array<i64: 2>, scalar_prefetch = 0 : i64, scratch_operands = 0 : i64, tpu.core_type = #tpu.core_type<tc>, window_params = [{transform_indices = @transform_0, window_bounds = array<i64: 88, 32>}, {pipeline_mode = #tpu.pipeline_mode<synchronous>, transform_indices = @transform_1, window_bounds = array<i64: 32, 128>}, {pipeline_mode = #tpu.pipeline_mode<synchronous>, transform_indices = @transform_2, window_bounds = array<i64: 1, 128>}, {transform_indices = @transform_3, window_bounds = array<i64: 88, 128>}]} {
    %c0 = arith.constant 0 : index
    %c0_0 = arith.constant 0 : index
    %0 = vector.load %arg1[%c0, %c0_0] : memref<88x32xf32, #tpu.memory_space<vmem>>, vector<88x32xf32>
    %c0_1 = arith.constant 0 : index
    %c0_2 = arith.constant 0 : index
    %1 = vector.load %arg2[%c0_1, %c0_2] : memref<32x128xf32, #tpu.memory_space<vmem>>, vector<32x128xf32>
    %cst = arith.constant dense<0.000000e+00> : vector<88x128xf32>
    %2 = tpu.matmul %0, %1, %cst {dimension_numbers = #tpu.dot_dimension_numbers<[1], [0], [0], [1], [0, 0, 1, 1], [], []>} : vector<88x32xf32>, vector<32x128xf32>, vector<88x128xf32> -> vector<88x128xf32>
    %c0_3 = arith.constant 0 : index
    %c0_4 = arith.constant 0 : index
    %3 = vector.load %arg3[%c0_3, %c0_4] : memref<1x128xf32, #tpu.memory_space<vmem>>, vector<1x128xf32>
    %4 = vector.broadcast %3 : vector<1x128xf32> to vector<88x128xf32>
    %5 = arith.addf %2, %4 : vector<88x128xf32>
    %c0_5 = arith.constant 0 : index
    %c0_6 = arith.constant 0 : index
    %6 = vector.load %arg4[%c0_5, %c0_6] : memref<88x128xf32, #tpu.memory_space<vmem>>, vector<88x128xf32>
    tpu.vector_store %arg4[%c0_5, %c0_6], %5 {strides = array<i32>} : memref<88x128xf32, #tpu.memory_space<vmem>>, vector<88x128xf32>,
    return
  }
  func.func @transform_0(%arg0: i32) -> (i32, i32) {
    %c0_i32 = arith.constant 0 : i32
    %c0_i32_0 = arith.constant 0 : i32
    return %arg0, %c0_i32 : i32, i32
  }
  func.func @transform_1(%arg0: i32) -> (i32, i32) {
    %c0_i32 = arith.constant 0 : i32
    %c0_i32_0 = arith.constant 0 : i32
    %c0_i32_1 = arith.constant 0 : i32
    return %c0_i32, %c0_i32_0 : i32, i32
  }
  func.func @transform_2(%arg0: i32) -> (i32, i32) {
    %c0_i32 = arith.constant 0 : i32
    %c0_i32_0 = arith.constant 0 : i32
    %c0_i32_1 = arith.constant 0 : i32
    return %c0_i32, %c0_i32_0 : i32, i32
  }
  func.func @transform_3(%arg0: i32) -> (i32, i32) {
    %c0_i32 = arith.constant 0 : i32
    %c0_i32_0 = arith.constant 0 : i32
    return %arg0, %c0_i32 : i32, i32
  }
}

</mosaic_0001>

<bundles_post_ra>
// kernel: squeeze.1
= control target key start
LH: loop header
LB: loop body
LE: loop exit
PB: predicated region body
PF: predicated region fallthrough
CT: control target
= control target key end

     0   :  { %vm107_vm0 = vcmask 1043458   ;;  %s155_s28 = smov 3  ;;  %s158_s29 = smov 12  ;;  %vm111_vm1 = vcmask 1045508   ;;  %vm91_vm2 = vcmask 56320   ;;  %vm2117_vm3 = vcmask 998400   ;;  %s4521_s0 = inlined_call_operand.vmem [shape: f32[2,2275], index: 0, kind: input, shape index: {}]   ;;  %s4522_s1 = inlined_call_operand.vmem [shape: f32[650,7], index: 1, kind: output, shape index: {}]  }
   0x1   :  { %v2312_v0 = vld [vmem:[%s4521_s0 + $0x1a] sm:$0x3]  ;;  %v2319_v1 = vld [vmem:[%s4521_s0 + $0xc] sm:$0x3]  ;;  %v2313_v2 = vld [vmem:[%s4521_s0 + $0x18] sm:$0x3] }
   0x2   :  { %28 = vst [vmem:[#allocation0 + $0x68] sm:$0x3] %v2312_v0  ;;  %63 = vst [vmem:[#allocation0 + $0x30] sm:$0x3] %v2319_v1  ;;  %v2320_v3 = vld [vmem:[%s4521_s0 + $0xa] sm:$0x3] }
   0x3   :  { %33 = vst [vmem:[#allocation0 + $0x60] sm:$0x3] %v2313_v2  ;;  %68 = vst [vmem:[#allocation0 + $0x28] sm:$0x3] %v2320_v3  ;;  %v2308_v4 = vld [vmem:[%s4521_s0 + $0x22] sm:$0x3] }
   0x4   :  { %v2315_v5 = vld [vmem:[%s4521_s0 + $0x14] sm:$0x3]  ;;  %8 = vst [vmem:[#allocation0 + $0x88] sm:$0x3] %v2308_v4  ;;  %v2322_v6 = vld [vmem:[%s4521_s0 + $0x6] sm:$0x3] }
   0x5   :  { %43 = vst [vmem:[#allocation0 + $0x50] sm:$0x3] %v2315_v5  ;;  %v2314_v7 = vld [vmem:[%s4521_s0 + $0x16] sm:$0x3]  ;;  %78 = vst [vmem:[#allocation0 + $0x18] sm:$0x3] %v2322_v6 }
   0x6   :  { %38 = vst [vmem:[#allocation0 + $0x58] sm:$0x3] %v2314_v7  ;;  %v2321_v8 = vld [vmem:[%s4521_s0 + $0x8] sm:$0x3]  ;;  %v2310_v9 = vld [vmem:[%s4521_s0 + $0x1e] sm:$0x3] }
   0x7   :  { %v2317_v10 = vld [vmem:[%s4521_s0 + $0x10] sm:$0x3]  ;;  %73 = vst [vmem:[#allocation0 + $0x20] sm:$0x3] %v2321_v8  ;;  %18 = vst [vmem:[#allocation0 + $0x78] sm:$0x3] %v2310_v9 }
   0x8   :  { %53 = vst [vmem:[#allocation0 + $0x40] sm:$0x3] %v2317_v10  ;;  %v2324_v11 = vld [vmem:[%s4521_s0 + $0x2] sm:$0x3]  ;;  %v2309_v12 = vld [vmem:[%s4521_s0 + $0x20] sm:$0x3] }
   0x9   :  { %87 = vst [vmem:[#allocation0 + $0x8] sm:$0x3] %v2324_v11  ;;  %13 = vst [vmem:[#allocation0 + $0x80] sm:$0x3] %v2309_v12  ;;  %v2316_v13 = vld [vmem:[%s4521_s0 + $0x12] sm:$0x3] }
   0xa   :  { %v2323_v14 = vld [vmem:[%s4521_s0 + $0x4] sm:$0x3]  ;;  %v2311_v15 = vld [vmem:[%s4521_s0 + $0x1c] sm:$0x3]  ;;  %48 = vst [vmem:[#allocation0 + $0x48] sm:$0x3] %v2316_v13 }
   0xb   :  { %83 = vst [vmem:[#allocation0 + $0x10] sm:$0x3] %v2323_v14  ;;  %23 = vst [vmem:[#allocation0 + $0x70] sm:$0x3] %v2311_v15  ;;  %v2318_v16 = vld [vmem:[%s4521_s0 + $0xe] sm:$0x3] }
   0xc   :  { %v88_v17 = vld [vmem:[%s4521_s0] sm:$0x3]  ;;  %v123_v18 = vld [vmem:[#allocation0 + $0x30] sm:$0x3]   ;;  %v125_v19 = vld [vmem:[#allocation0 + $0x66] sm:$0xc]  }
   0xd   :  { %58 = vst [vmem:[#allocation0 + $0x38] sm:$0x3] %v2318_v16  ;;  %89 = vst [vmem:[#allocation0] sm:$0x3] %v88_v17  ;;  %v127_v20 = vsel %vm107_vm0, %v125_v19, %v123_v18  ;;  %v156_v21 = vld [vmem:[#allocation0 + $0x29] ss:$-1 sm:%s155_s28]  }
   0xe   :  { %v159_v22 = vld [vmem:[#allocation0 + $0x63] ss:$-1 sm:%s158_s29]   ;;  %s2791_s0 = smov 126   ;;  %v106_v24 = vld [vmem:[#allocation0 + $0x4e] sm:$0xc]   ;;  %s2792_s15 = smov 124  }
   0xf   :  { %128 = vrot.lane.b32.xlu0 %v127_v20, %s2791_s0  ;;  %v161_v23 = vsel %vm107_vm0, %v159_v22, %v156_v21  ;;  %v110_v25 = vld [vmem:[#allocation0 + $0x84] sm:$0x30]   ;;  %v104_v26 = vld [vmem:[#allocation0 + $0x18] sm:$0x3]   ;;  %v189_v29 = vld [vmem:[#allocation0 + $0x20] sm:$0x3]  }
  0x10   :  { %162 = vrot.lane.b32.xlu1 %v161_v23, %s2792_s15  ;;  %v191_v27 = vld [vmem:[#allocation0 + $0x56] sm:$0xc]   ;;  %v108_v28 = vsel %vm107_vm0, %v106_v24, %v104_v26  ;;  %v172_v30 = vld [vmem:[#allocation0 + $0x3e] sm:$0xc]   ;;  %v170_v34 = vld [vmem:[#allocation0 + $0x8] sm:$0x3]  }
  0x11   :  { %v176_v31 = vld [vmem:[#allocation0 + $0x74] sm:$0x30]   ;;  %v112_v32 = vsel %vm111_vm1, %v110_v25, %v108_v28  ;;  %v193_v33 = vsel %vm107_vm0, %v191_v27, %v189_v29  ;;  %v142_v35 = vld [vmem:[#allocation0 + $0x7c] sm:$0x30]   ;;  %v222_v36 = vld [vmem:[#allocation0 + $0x4e] sm:$0xc]   ;;  %v174_v37 = vsel %vm107_vm0, %v172_v30, %v170_v34 }
  0x12   :  { %s2793_s16 = smov 127   ;;  %v136_v38 = vld [vmem:[#allocation0 + $0x10] sm:$0x3]   ;;  %v138_v39 = vld [vmem:[#allocation0 + $0x46] sm:$0xc]   ;;  %s2794_s17 = smov 122   ;;  %v178_v41 = vsel %vm111_vm1, %v176_v31, %v174_v37 }
  0x13   :  { %113 = vrot.lane.b32.xlu0 %v112_v32, %s2793_s16  ;;  %v220_v40 = vld [vmem:[#allocation0 + $0x18] sm:$0x3]   ;;  %v140_v42 = vsel %vm107_vm0, %v138_v39, %v136_v38  ;;  %v207_v47 = vld [vmem:[#allocation0 + $0x6c] sm:$0x30]   ;;  %v226_v49 = vld [vmem:[#allocation0 + $0x84] sm:$0x30]  }
  0x14   :  { %194 = vrot.lane.b32.xlu1 %v193_v33, %s2794_s17  ;;  %v201_v43 = vld [vmem:[#allocation0] sm:$0x3]   ;;  %v203_v44 = vld [vmem:[#allocation0 + $0x36] sm:$0xc]   ;;  %v144_v45 = vsel %vm111_vm1, %v142_v35, %v140_v42  ;;  %v224_v48 = vsel %vm107_vm0, %v222_v36, %v220_v40  ;;  %s2795_s18 = smov 123   ;;  %s2796_s19 = smov 125  }
  0x15   :  { %v205_v46 = vsel %vm107_vm0, %v203_v44, %v201_v43  ;;  %v252_v50 = vld [vmem:[#allocation0 + $0x10] sm:$0x3]   ;;  %v254_v51 = vld [vmem:[#allocation0 + $0x46] sm:$0xc]   ;;  %v228_v53 = vsel %vm111_vm1, %v226_v49, %v224_v48  ;;  %v258_v57 = vld [vmem:[#allocation0 + $0x7c] sm:$0x30]  }
  0x16   :  { %v209_v52 = vsel %vm111_vm1, %v207_v47, %v205_v46  ;;  %v239_v54 = vld [vmem:[#allocation0 + $0x30] sm:$0x3]   ;;  %v241_v55 = vld [vmem:[#allocation0 + $0x66] sm:$0xc]   ;;  %v256_v56 = vsel %vm107_vm0, %v254_v51, %v252_v50  ;;  %s271_s20 = smov 3  ;;  %s274_s21 = smov 12 }
  0x17   :  { %179 = vrot.lane.b32.xlu0 %v178_v41, %s2795_s18  ;;  %s2797_s22 = smov 121   ;;  %v286_v58 = vld [vmem:[#allocation0 + $0x8] sm:$0x3]   ;;  %v288_v59 = vld [vmem:[#allocation0 + $0x3e] sm:$0xc]   ;;  %s2798_s23 = smov 120   ;;  %v243_v60 = vsel %vm107_vm0, %v241_v55, %v239_v54  ;;  %v260_v61 = vsel %vm111_vm1, %v258_v57, %v256_v56 }
  0x18   :  { %145 = vrot.lane.b32.xlu1 %v144_v45, %s2796_s19  ;;  %v272_v62 = vld [vmem:[#allocation0 + $0x29] ss:$-1 sm:%s271_s20]   ;;  %v290_v0 = vsel %vm107_vm0, %v288_v59, %v286_v58  ;;  %v292_v1 = vld [vmem:[#allocation0 + $0x74] sm:$0x30]   ;;  %s2799_s24 = smov 119   ;;  %s2800_s25 = smov 118  }
  0x19   :  { %v275_v63 = vld [vmem:[#allocation0 + $0x63] ss:$-1 sm:%s274_s21]   ;;  %v319_v3 = vld [vmem:[#allocation0 + $0x36] sm:$0xc]   ;;  %v294_v5 = vsel %vm111_vm1, %v292_v1, %v290_v0  ;;  %v323_v9 = vld [vmem:[#allocation0 + $0x6c] sm:$0x30]  }
  0x1a   :  { %v317_v2 = vld [vmem:[#allocation0] sm:$0x3]   ;;  %v277_v4 = vsel %vm107_vm0, %v275_v63, %v272_v62  ;;  %v307_v7 = vld [vmem:[#allocation0 + $0x56] sm:$0xc]   ;;  %v338_v11 = vld [vmem:[#allocation0 + $0x4e] sm:$0xc]  }
  0x1b   :  { %210 = vrot.lane.b32.xlu0 %v209_v52, %s2797_s22  ;;  %v305_v6 = vld [vmem:[#allocation0 + $0x20] sm:$0x3]   ;;  %v321_v8 = vsel %vm107_vm0, %v319_v3, %v317_v2  ;;  %v336_v10 = vld [vmem:[#allocation0 + $0x18] sm:$0x3]   ;;  %s2801_s26 = smov 117   ;;  %s2802_s27 = smov 116  }
  0x1c   :  { %229 = vrot.lane.b32.xlu1 %v228_v53, %s2798_s23  ;;  %v309_v12 = vsel %vm107_vm0, %v307_v7, %v305_v6  ;;  %v325_v13 = vsel %vm111_vm1, %v323_v9, %v321_v8  ;;  %v340_v14 = vsel %vm107_vm0, %v338_v11, %v336_v10  ;;  %v342_v15 = vld [vmem:[#allocation0 + $0x84] sm:$0x30]   ;;  %v355_v16 = vld [vmem:[#allocation0 + $0x30] sm:$0x3]   ;;  %s2803_s28 = smov 115   ;;  %s387_s29 = smov 3 }
  0x1d   :  { %v357_v17 = vld [vmem:[#allocation0 + $0x66] sm:$0xc]   ;;  %v368_v18 = vld [vmem:[#allocation0 + $0x10] sm:$0x3]   ;;  %s390_s30 = smov 12  ;;  %s2804_s2 = smov 114   ;;  %v344_v20 = vsel %vm111_vm1, %v342_v15, %v340_v14 }
  0x1e   :  { %v370_v19 = vld [vmem:[#allocation0 + $0x46] sm:$0xc]   ;;  %v359_v21 = vsel %vm107_vm0, %v357_v17, %v355_v16  ;;  %v374_v23 = vld [vmem:[#allocation0 + $0x7c] sm:$0x30]   ;;  %s2805_s3 = smov 113   ;;  %s2806_s4 = smov 112  }
  0x1f   :  { %244 = vrot.lane.b32.xlu0 %v243_v60, %s2799_s24  ;;  %v372_v22 = vsel %vm107_vm0, %v370_v19, %v368_v18  ;;  %v402_v24 = vld [vmem:[#allocation0 + $0x8] sm:$0x3]   ;;  %v391_v26 = vld [vmem:[#allocation0 + $0x63] ss:$-1 sm:%s390_s30]   ;;  %v408_v31 = vld [vmem:[#allocation0 + $0x74] sm:$0x30]  }
  0x20   :  { %261 = vrot.lane.b32.xlu1 %v260_v61, %s2800_s25  ;;  %v388_v25 = vld [vmem:[#allocation0 + $0x29] ss:$-1 sm:%s387_s29]   ;;  %v404_v27 = vld [vmem:[#allocation0 + $0x3e] sm:$0xc]   ;;  %v376_v28 = vsel %vm111_vm1, %v374_v23, %v372_v22  ;;  %v423_v33 = vld [vmem:[#allocation0 + $0x56] sm:$0xc]  }
  0x21   :  { %v393_v29 = vsel %vm107_vm0, %v391_v26, %v388_v25  ;;  %v406_v30 = vsel %vm107_vm0, %v404_v27, %v402_v24  ;;  %v421_v32 = vld [vmem:[#allocation0 + $0x20] sm:$0x3]   ;;  %v435_v35 = vld [vmem:[#allocation0 + $0x36] sm:$0xc]   ;;  %s2807_s5 = smov 111   ;;  %s2808_s6 = smov 110  }
  0x22   :  { %v433_v34 = vld [vmem:[#allocation0] sm:$0x3]   ;;  %v452_v36 = vld [vmem:[#allocation0 + $0x18] sm:$0x3]   ;;  %v454_v37 = vld [vmem:[#allocation0 + $0x4e] sm:$0xc]   ;;  %v410_v38 = vsel %vm111_vm1, %v408_v31, %v406_v30  ;;  %v425_v39 = vsel %vm107_vm0, %v423_v33, %v421_v32 }
  0x23   :  { %278 = vrot.lane.b32.xlu0 %v277_v4, %s2801_s26  ;;  %v437_v40 = vsel %vm107_vm0, %v435_v35, %v433_v34  ;;  %v439_v41 = vld [vmem:[#allocation0 + $0x6c] sm:$0x30]   ;;  %v456_v42 = vsel %vm107_vm0, %v454_v37, %v452_v36  ;;  %v458_v43 = vld [vmem:[#allocation0 + $0x84] sm:$0x30]   ;;  %s2809_s7 = smov 109   ;;  %s2810_s8 = smov 108  }
  0x24   :  { %295 = vrot.lane.b32.xlu1 %v294_v5, %s2802_s27  ;;  %v484_v44 = vld [vmem:[#allocation0 + $0x10] sm:$0x3]   ;;  %v486_v45 = vld [vmem:[#allocation0 + $0x46] sm:$0xc]   ;;  %v441_v46 = vsel %vm111_vm1, %v439_v41, %v437_v40  ;;  %v460_v47 = vsel %vm111_vm1, %v458_v43, %v456_v42  ;;  %v490_v51 = vld [vmem:[#allocation0 + $0x7c] sm:$0x30]  }
  0x25   :  { %v471_v48 = vld [vmem:[#allocation0 + $0x30] sm:$0x3]   ;;  %v473_v49 = vld [vmem:[#allocation0 + $0x66] sm:$0xc]   ;;  %v488_v50 = vsel %vm107_vm0, %v486_v45, %v484_v44  ;;  %s503_s9 = smov 3  ;;  %s506_s10 = smov 12 }
  0x26   :  { %s2811_s11 = smov 107   ;;  %v518_v52 = vld [vmem:[#allocation0 + $0x8] sm:$0x3]   ;;  %v520_v53 = vld [vmem:[#allocation0 + $0x3e] sm:$0xc]   ;;  %s2812_s12 = smov 106   ;;  %v475_v54 = vsel %vm107_vm0, %v473_v49, %v471_v48  ;;  %v492_v55 = vsel %vm111_vm1, %v490_v51, %v488_v50 }
  0x27   :  { %310 = vrot.lane.b32.xlu0 %v309_v12, %s2803_s28  ;;  %v504_v56 = vld [vmem:[#allocation0 + $0x29] ss:$-1 sm:%s503_s9]   ;;  %v522_v58 = vsel %vm107_vm0, %v520_v53, %v518_v52  ;;  %v524_v59 = vld [vmem:[#allocation0 + $0x74] sm:$0x30]   ;;  %s2813_s13 = smov 105   ;;  %s568_s14 = smov 3 }
  0x28   :  { %326 = vrot.lane.b32.xlu1 %v325_v13, %s2804_s2  ;;  %v507_v57 = vld [vmem:[#allocation0 + $0x63] ss:$-1 sm:%s506_s10]   ;;  %v551_v61 = vld [vmem:[#allocation0 + $0x36] sm:$0xc]   ;;  %s571_s0 = smov 12  ;;  %s2814_s15 = smov 104   ;;  %v526_v63 = vsel %vm111_vm1, %v524_v59, %v522_v58 }
  0x29   :  { %v549_v60 = vld [vmem:[#allocation0] sm:$0x3]   ;;  %v509_v62 = vsel %vm107_vm0, %v507_v57, %v504_v56  ;;  %v539_v1 = vld [vmem:[#allocation0 + $0x56] sm:$0xc]   ;;  %v555_v2 = vld [vmem:[#allocation0 + $0x6c] sm:$0x30]  }
  0x2a   :  { %v537_v0 = vld [vmem:[#allocation0 + $0x20] sm:$0x3]   ;;  %v553_v3 = vsel %vm107_vm0, %v551_v61, %v549_v60  ;;  %v569_v4 = vld [vmem:[#allocation0 + $0x19] ss:$-1 sm:%s568_s14]   ;;  %s576_s16 = smov 48  ;;  %s2815_s17 = smov 103  }
  0x2b   :  { %345 = vrot.lane.b32.xlu0 %v344_v20, %s2805_s3  ;;  %v572_v5 = vld [vmem:[#allocation0 + $0x53] ss:$-1 sm:%s571_s0]   ;;  %s2816_s18 = smov 102   ;;  %v541_v6 = vsel %vm107_vm0, %v539_v1, %v537_v0  ;;  %v557_v7 = vsel %vm111_vm1, %v555_v2, %v553_v3  ;;  %v592_v11 = vld [vmem:[#allocation0 + $0x66] sm:$0xc]   ;;  %s2817_s19 = smov 101  }
  0x2c   :  { %360 = vrot.lane.b32.xlu1 %v359_v21, %s2806_s4  ;;  %v574_v8 = vsel %vm107_vm0, %v572_v5, %v569_v4  ;;  %v577_v9 = vld [vmem:[#allocation0 + $0x8d] ss:$-1 sm:%s576_s16]   ;;  %v590_v10 = vld [vmem:[#allocation0 + $0x30] sm:$0x3]   ;;  %s2818_s20 = smov 100   ;;  %s2819_s21 = smov 99  }
  0x2d   :  { %v603_v12 = vld [vmem:[#allocation0 + $0x10] sm:$0x3]   ;;  %v605_v13 = vld [vmem:[#allocation0 + $0x46] sm:$0xc]   ;;  %v579_v14 = vsel %vm111_vm1, %v577_v9, %v574_v8  ;;  %v594_v15 = vsel %vm107_vm0, %v592_v11, %v590_v10  ;;  %v609_v17 = vld [vmem:[#allocation0 + $0x7c] sm:$0x30]  }
  0x2e   :  { %v607_v16 = vsel %vm107_vm0, %v605_v13, %v603_v12  ;;  %v622_v18 = vld [vmem:[#allocation0 + $0x28] sm:$0x3]   ;;  %v624_v19 = vld [vmem:[#allocation0 + $0x5e] sm:$0xc]   ;;  %s2820_s22 = smov 98   ;;  %s685_s23 = smov 3 }
  0x2f   :  { %377 = vrot.lane.b32.xlu0 %v376_v28, %s2807_s5  ;;  %v635_v20 = vld [vmem:[#allocation0 + $0x8] sm:$0x3]   ;;  %v637_v21 = vld [vmem:[#allocation0 + $0x3e] sm:$0xc]   ;;  %v611_v22 = vsel %vm111_vm1, %v609_v17, %v607_v16  ;;  %s688_s24 = smov 12  ;;  %v626_v23 = vsel %vm107_vm0, %v624_v19, %v622_v18  ;;  %s2821_s25 = smov 97  }
  0x30   :  { %394 = vrot.lane.b32.xlu1 %v393_v29, %s2808_s6  ;;  %v639_v24 = vsel %vm107_vm0, %v637_v21, %v635_v20  ;;  %v641_v25 = vld [vmem:[#allocation0 + $0x74] sm:$0x30]   ;;  %v654_v26 = vld [vmem:[#allocation0 + $0x20] sm:$0x3]   ;;  %v689_v31 = vld [vmem:[#allocation0 + $0x53] ss:$-1 sm:%s688_s24]  }
  0x31   :  { %v656_v27 = vld [vmem:[#allocation0 + $0x56] sm:$0xc]   ;;  %v666_v28 = vld [vmem:[#allocation0] sm:$0x3]   ;;  %s693_s26 = smov 48  ;;  %s2822_s27 = smov 96   ;;  %v643_v32 = vsel %vm111_vm1, %v641_v25, %v639_v24 }
  0x32   :  { %v668_v29 = vld [vmem:[#allocation0 + $0x36] sm:$0xc]   ;;  %v658_v33 = vsel %vm107_vm0, %v656_v27, %v654_v26  ;;  %v672_v35 = vld [vmem:[#allocation0 + $0x6c] sm:$0x30]   ;;  %v694_v37 = vld [vmem:[#allocation0 + $0x8d] ss:$-1 sm:%s693_s26]  }
  0x33   :  { %411 = vrot.lane.b32.xlu0 %v410_v38, %s2809_s7  ;;  %v686_v30 = vld [vmem:[#allocation0 + $0x19] ss:$-1 sm:%s685_s23]   ;;  %v670_v34 = vsel %vm107_vm0, %v668_v29, %v666_v28  ;;  %s2823_s28 = smov 95   ;;  %v720_v38 = vld [vmem:[#allocation0 + $0x10] sm:$0x3]   ;;  %s2824_s29 = smov 94  }
  0x34   :  { %426 = vrot.lane.b32.xlu1 %v425_v39, %s2810_s8  ;;  %v691_v36 = vsel %vm107_vm0, %v689_v31, %v686_v30  ;;  %v722_v39 = vld [vmem:[#allocation0 + $0x46] sm:$0xc]   ;;  %v674_v40 = vsel %vm111_vm1, %v672_v35, %v670_v34  ;;  %v707_v42 = vld [vmem:[#allocation0 + $0x30] sm:$0x3]   ;;  %v726_v45 = vld [vmem:[#allocation0 + $0x7c] sm:$0x30]  }
  0x35   :  { %v696_v41 = vsel %vm111_vm1, %v694_v37, %v691_v36  ;;  %v709_v43 = vld [vmem:[#allocation0 + $0x66] sm:$0xc]   ;;  %v724_v44 = vsel %vm107_vm0, %v722_v39, %v720_v38  ;;  %s2825_s30 = smov 93   ;;  %s2826_s2 = smov 92   ;;  %v741_v51 = vld [vmem:[#allocation0 + $0x5e] sm:$0xc]  }
  0x36   :  { %v711_v48 = vsel %vm107_vm0, %v709_v43, %v707_v42  ;;  %v728_v49 = vsel %vm111_vm1, %v726_v45, %v724_v44  ;;  %v739_v50 = vld [vmem:[#allocation0 + $0x28] sm:$0x3]   ;;  %v758_v53 = vld [vmem:[#allocation0 + $0x74] sm:$0x30]   ;;  %s2827_s3 = smov 91   ;;  %s802_s4 = smov 3 }
  0x37   :  { %442 = vrot.lane.b32.xlu0 %v441_v46, %s2811_s11  ;;  %v752_v46 = vld [vmem:[#allocation0 + $0x8] sm:$0x3]   ;;  %s805_s5 = smov 12  ;;  %s2828_s6 = smov 90   ;;  %v743_v56 = vsel %vm107_vm0, %v741_v51, %v739_v50  ;;  %v771_v58 = vld [vmem:[#allocation0 + $0x20] sm:$0x3]  }
  0x38   :  { %461 = vrot.lane.b32.xlu1 %v460_v47, %s2812_s12  ;;  %v754_v47 = vld [vmem:[#allocation0 + $0x3e] sm:$0xc]   ;;  %v773_v59 = vld [vmem:[#allocation0 + $0x56] sm:$0xc]   ;;  %v789_v60 = vld [vmem:[#allocation0 + $0x6c] sm:$0x30]  }
  0x39   :  { %v756_v52 = vsel %vm107_vm0, %v754_v47, %v752_v46  ;;  %s810_s7 = smov 48  ;;  %s2829_s8 = smov 89   ;;  %v775_v0 = vsel %vm107_vm0, %v773_v59, %v771_v58  ;;  %v824_v4 = vld [vmem:[#allocation0 + $0x30] sm:$0x3]   ;;  %v826_v5 = vld [vmem:[#allocation0 + $0x66] sm:$0xc]  }
  0x3a   :  { %v760_v57 = vsel %vm111_vm1, %v758_v53, %v756_v52  ;;  %s2830_s9 = smov 88   ;;  %v811_v3 = vld [vmem:[#allocation0 + $0x8d] ss:$-1 sm:%s810_s7]   ;;  %s2831_s10 = smov 87   ;;  %v828_v9 = vsel %vm107_vm0, %v826_v5, %v824_v4  ;;  %v843_v11 = vld [vmem:[#allocation0 + $0x7c] sm:$0x30]  }
  0x3b   :  { %476 = vrot.lane.b32.xlu0 %v475_v54, %s2813_s13  ;;  %v783_v54 = vld [vmem:[#allocation0] sm:$0x3]   ;;  %s2832_s11 = smov 86   ;;  %v856_v12 = vld [vmem:[#allocation0 + $0x28] sm:$0x3]   ;;  %s2833_s12 = smov 85  }
  0x3c   :  { %493 = vrot.lane.b32.xlu1 %v492_v55, %s2814_s15  ;;  %v785_v55 = vld [vmem:[#allocation0 + $0x36] sm:$0xc]   ;;  %v858_v13 = vld [vmem:[#allocation0 + $0x5e] sm:$0xc]   ;;  %s2834_s13 = smov 84   ;;  %s919_s14 = smov 3 }
  0x3d   :  { %v787_v61 = vsel %vm107_vm0, %v785_v55, %v783_v54  ;;  %s922_s0 = smov 12  ;;  %v860_v17 = vsel %vm107_vm0, %v858_v13, %v856_v12  ;;  %v875_v19 = vld [vmem:[#allocation0 + $0x74] sm:$0x30]   ;;  %v888_v20 = vld [vmem:[#allocation0 + $0x20] sm:$0x3]   ;;  %s2835_s15 = smov 83  }
  0x3e   :  { %v791_v1 = vsel %vm111_vm1, %v789_v60, %v787_v61  ;;  %v890_v21 = vld [vmem:[#allocation0 + $0x56] sm:$0xc]   ;;  %v923_v25 = vld [vmem:[#allocation0 + $0x53] ss:$-1 sm:%s922_s0]   ;;  %s927_s16 = smov 48  ;;  %s1036_s23 = smov 3 }
  0x3f   :  { %510 = vrot.lane.b32.xlu0 %v509_v62, %s2815_s17  ;;  %v803_v62 = vld [vmem:[#allocation0 + $0x19] ss:$-1 sm:%s802_s4]   ;;  %s2836_s17 = smov 82   ;;  %v892_v27 = vsel %vm107_vm0, %v890_v21, %v888_v20  ;;  %v906_v29 = vld [vmem:[#allocation0 + $0x6c] sm:$0x30]   ;;  %s1039_s24 = smov 12 }
  0x40   :  { %527 = vrot.lane.b32.xlu1 %v526_v63, %s2816_s18  ;;  %v806_v63 = vld [vmem:[#allocation0 + $0x53] ss:$-1 sm:%s805_s5]   ;;  %s2837_s18 = smov 81   ;;  %v943_v37 = vld [vmem:[#allocation0 + $0x66] sm:$0xc]   ;;  %s1044_s26 = smov 48 }
  0x41   :  { %v808_v2 = vsel %vm107_vm0, %v806_v63, %v803_v62  ;;  %v920_v24 = vld [vmem:[#allocation0 + $0x19] ss:$-1 sm:%s919_s14]   ;;  %v928_v31 = vld [vmem:[#allocation0 + $0x8d] ss:$-1 sm:%s927_s16]   ;;  %v941_v36 = vld [vmem:[#allocation0 + $0x30] sm:$0x3]  }
  0x42   :  { %v813_v8 = vsel %vm111_vm1, %v811_v3, %v808_v2  ;;  %v925_v30 = vsel %vm107_vm0, %v923_v25, %v920_v24  ;;  %v960_v39 = vld [vmem:[#allocation0 + $0x7c] sm:$0x30]   ;;  %v945_v42 = vsel %vm107_vm0, %v943_v37, %v941_v36  ;;  %v973_v44 = vld [vmem:[#allocation0 + $0x28] sm:$0x3]   ;;  %v992_v47 = vld [vmem:[#allocation0 + $0x74] sm:$0x30]  }
  0x43   :  { %542 = vrot.lane.b32.xlu0 %v541_v6, %s2817_s19  ;;  %v837_v6 = vld [vmem:[#allocation0 + $0x10] sm:$0x3]   ;;  %s2838_s19 = smov 80   ;;  %v930_v35 = vsel %vm111_vm1, %v928_v31, %v925_v30  ;;  %v975_v45 = vld [vmem:[#allocation0 + $0x5e] sm:$0xc]   ;;  %s1111_s4 = smov 48 }
  0x44   :  { %558 = vrot.lane.b32.xlu1 %v557_v7, %s2818_s20  ;;  %v839_v7 = vld [vmem:[#allocation0 + $0x46] sm:$0xc]   ;;  %s2839_s20 = smov 79   ;;  %v977_v50 = vsel %vm107_vm0, %v975_v45, %v973_v44  ;;  %v1005_v52 = vld [vmem:[#allocation0 + $0x20] sm:$0x3]   ;;  %s2847_s5 = smov 71  }
  0x45   :  { %v841_v10 = vsel %vm107_vm0, %v839_v7, %v837_v6  ;;  %v1007_v53 = vld [vmem:[#allocation0 + $0x56] sm:$0xc]   ;;  %v1023_v54 = vld [vmem:[#allocation0 + $0x6c] sm:$0x30]   ;;  %v1045_v61 = vld [vmem:[#allocation0 + $0x8d] ss:$-1 sm:%s1044_s26]  }
  0x46   :  { %v845_v16 = vsel %vm111_vm1, %v843_v11, %v841_v10  ;;  %v1009_v58 = vsel %vm107_vm0, %v1007_v53, %v1005_v52  ;;  %v1058_v62 = vld [vmem:[#allocation0 + $0x30] sm:$0x3]   ;;  %v1060_v63 = vld [vmem:[#allocation0 + $0x66] sm:$0xc]   ;;  %v1077_v5 = vld [vmem:[#allocation0 + $0x7c] sm:$0x30]  }
  0x47   :  { %580 = vrot.lane.b32.xlu0 %v579_v14, %s2819_s21  ;;  %v869_v14 = vld [vmem:[#allocation0 + $0x8] sm:$0x3]   ;;  %s2840_s21 = smov 78   ;;  %v1062_v3 = vsel %vm107_vm0, %v1060_v63, %v1058_v62  ;;  %v1092_v7 = vld [vmem:[#allocation0 + $0x5e] sm:$0xc]   ;;  %s2853_s7 = smov 65  }
  0x48   :  { %595 = vrot.lane.b32.xlu1 %v594_v15, %s2820_s22  ;;  %v871_v15 = vld [vmem:[#allocation0 + $0x3e] sm:$0xc]   ;;  %s2841_s22 = smov 77   ;;  %v1090_v6 = vld [vmem:[#allocation0 + $0x28] sm:$0x3]   ;;  %s1228_s14 = smov 48 }
  0x49   :  { %v873_v18 = vsel %vm107_vm0, %v871_v15, %v869_v14  ;;  %v1094_v12 = vsel %vm107_vm0, %v1092_v7, %v1090_v6  ;;  %v1112_v14 = vld [vmem:[#allocation0 + $0x7d] ss:$-1 sm:%s1111_s4]   ;;  %v1125_v15 = vld [vmem:[#allocation0 + $0x20] sm:$0x3]   ;;  %v1158_v21 = vld [vmem:[#allocation0 + $0x4e] sm:$0xc]  }
  0x4a   :  { %v877_v26 = vsel %vm111_vm1, %v875_v19, %v873_v18  ;;  %v1137_v18 = vld [vmem:[#allocation0] sm:$0x3]   ;;  %v1139_v19 = vld [vmem:[#allocation0 + $0x36] sm:$0xc]   ;;  %v1188_v30 = vld [vmem:[#allocation0 + $0x10] sm:$0x3]  }
  0x4b   :  { %612 = vrot.lane.b32.xlu0 %v611_v22, %s2821_s25  ;;  %v900_v22 = vld [vmem:[#allocation0] sm:$0x3]   ;;  %s2842_s25 = smov 76   ;;  %v1156_v20 = vld [vmem:[#allocation0 + $0x18] sm:$0x3]   ;;  %v1141_v25 = vsel %vm107_vm0, %v1139_v19, %v1137_v18  ;;  %s2854_s0 = smov 64  }
  0x4c   :  { %627 = vrot.lane.b32.xlu1 %v626_v23, %s2822_s27  ;;  %v902_v23 = vld [vmem:[#allocation0 + $0x36] sm:$0xc]   ;;  %s2843_s27 = smov 75   ;;  %v1190_v31 = vld [vmem:[#allocation0 + $0x46] sm:$0xc]   ;;  %s2857_s4 = smov 61  }
  0x4d   :  { %v904_v28 = vsel %vm107_vm0, %v902_v23, %v900_v22  ;;  %v1177_v36 = vld [vmem:[#allocation0 + $0x66] sm:$0xc]   ;;  %v1305_v6 = vld [vmem:[#allocation0 + $0x10] sm:$0x3]   ;;  %s2865_s26 = smov 53   ;;  %s2868_s16 = smov 50  }
  0x4e   :  { %v908_v34 = vsel %vm111_vm1, %v906_v29, %v904_v28  ;;  %v1160_v28 = vsel %vm107_vm0, %v1158_v21, %v1156_v20  ;;  %v1162_v29 = vld [vmem:[#allocation0 + $0x84] sm:$0x30]   ;;  %vm2147_vm4 = vcmask 1006592   ;;  %vm2181_vm5 = vcmask 1014784  }
  0x4f   :  { %644 = vrot.lane.b32.xlu0 %v643_v32, %s2823_s28  ;;  %v954_v32 = vld [vmem:[#allocation0 + $0x10] sm:$0x3]   ;;  %s2844_s28 = smov 74   ;;  %v1207_v45 = vld [vmem:[#allocation0 + $0x28] sm:$0x3]   ;;  %vm2215_vm6 = vcmask 1022976  }
  0x50   :  { %659 = vrot.lane.b32.xlu1 %v658_v33, %s2824_s29  ;;  %v956_v33 = vld [vmem:[#allocation0 + $0x46] sm:$0xc]   ;;  %s2845_s29 = smov 73   ;;  %vm2248_vm7 = vcmask 1031168   ;;  %vm2278_vm8 = vcmask 1039360   ;;  %vm2121_vm9 = vcmask 48128  }
  0x51   :  { %v958_v38 = vsel %vm107_vm0, %v956_v33, %v954_v32  ;;  %v1307_v7 = vld [vmem:[#allocation0 + $0x46] sm:$0xc]   ;;  %vm2128_vm10 = vcmask 56368   ;;  %vm2151_vm11 = vcmask 39936   ;;  %vm2156_vm12 = vcmask 56360  }
  0x52   :  { %v962_v43 = vsel %vm111_vm1, %v960_v39, %v958_v38  ;;  %v1192_v38 = vsel %vm107_vm0, %v1190_v31, %v1188_v30  ;;  %v1194_v39 = vld [vmem:[#allocation0 + $0x7c] sm:$0x30]   ;;  %vm2185_vm13 = vcmask 31744   ;;  %vm2192_vm14 = vcmask 56352  }
  0x53   :  { %675 = vrot.lane.b32.xlu0 %v674_v40, %s2825_s30  ;;  %v986_v40 = vld [vmem:[#allocation0 + $0x8] sm:$0x3]   ;;  %s1103_s30 = smov 3  ;;  %v1196_v44 = vsel %vm111_vm1, %v1194_v39, %v1192_v38  ;;  %v1422_v38 = vld [vmem:[#allocation0 + $0x10] sm:$0x3]   ;;  %vm2219_vm15 = vcmask 23552  }
  0x54   :  { %697 = vrot.lane.b32.xlu1 %v696_v41, %s2826_s2  ;;  %v988_v41 = vld [vmem:[#allocation0 + $0x3e] sm:$0xc]   ;;  %s1106_s2 = smov 12  ;;  %v1424_v39 = vld [vmem:[#allocation0 + $0x46] sm:$0xc]  }
  0x55   :  { %v990_v46 = vsel %vm107_vm0, %v988_v41, %v986_v40 }
  0x56   :  { %v994_v51 = vsel %vm111_vm1, %v992_v47, %v990_v46  ;;  %v1209_v46 = vld [vmem:[#allocation0 + $0x5e] sm:$0xc]  }
  0x57   :  { %712 = vrot.lane.b32.xlu0 %v711_v48, %s2827_s3  ;;  %v1017_v48 = vld [vmem:[#allocation0] sm:$0x3]   ;;  %s2846_s3 = smov 72   ;;  %v1211_v52 = vsel %vm107_vm0, %v1209_v46, %v1207_v45  ;;  %v1426_v46 = vsel %vm107_vm0, %v1424_v39, %v1422_v38 }
  0x58   :  { %729 = vrot.lane.b32.xlu1 %v728_v49, %s2828_s6  ;;  %v1019_v49 = vld [vmem:[#allocation0 + $0x36] sm:$0xc]   ;;  %s2848_s6 = smov 70  }
  0x59   :  { %v1021_v55 = vsel %vm107_vm0, %v1019_v49, %v1017_v48  ;;  %v1229_v49 = vld [vmem:[#allocation0 + $0x7d] ss:$-1 sm:%s1228_s14]  }
  0x5a   :  { %v1025_v59 = vsel %vm111_vm1, %v1023_v54, %v1021_v55  ;;  %v1242_v55 = vld [vmem:[#allocation0 + $0x20] sm:$0x3]  }
  0x5b   :  { %744 = vrot.lane.b32.xlu0 %v743_v56, %s2829_s8  ;;  %v1037_v56 = vld [vmem:[#allocation0 + $0x19] ss:$-1 sm:%s1036_s23]   ;;  %s1340_s23 = smov 12  ;;  %s2862_s8 = smov 56  }
  0x5c   :  { %761 = vrot.lane.b32.xlu1 %v760_v57, %s2830_s9  ;;  %v1040_v57 = vld [vmem:[#allocation0 + $0x53] ss:$-1 sm:%s1039_s24]   ;;  %s2860_s24 = smov 58   ;;  %s2885_s9 = smov 33  }
  0x5d   :  { %v1042_v60 = vsel %vm107_vm0, %v1040_v57, %v1037_v56  ;;  %v1244_v56 = vld [vmem:[#allocation0 + $0x56] sm:$0xc]  }
  0x5e   :  { %v1047_v2 = vsel %vm111_vm1, %v1045_v61, %v1042_v60  ;;  %v1273_v60 = vld [vmem:[#allocation0 + $0x18] sm:$0x3]   ;;  %v1275_v61 = vld [vmem:[#allocation0 + $0x4e] sm:$0xc]   ;;  %v1246_v62 = vsel %vm107_vm0, %v1244_v56, %v1242_v55 }
  0x5f   :  { %776 = vrot.lane.b32.xlu0 %v775_v0, %s2831_s10  ;;  %v1071_v0 = vld [vmem:[#allocation0 + $0x10] sm:$0x3]   ;;  %s2876_s10 = smov 42  }
  0x60   :  { %792 = vrot.lane.b32.xlu1 %v791_v1, %s2832_s11  ;;  %v1073_v1 = vld [vmem:[#allocation0 + $0x46] sm:$0xc]   ;;  %s2849_s11 = smov 69  }
  0x61   :  { %v1075_v4 = vsel %vm107_vm0, %v1073_v1, %v1071_v0  ;;  %v1277_v1 = vsel %vm107_vm0, %v1275_v61, %v1273_v60 }
  0x62   :  { %v1079_v10 = vsel %vm111_vm1, %v1077_v5, %v1075_v4  ;;  %v1294_v5 = vld [vmem:[#allocation0 + $0x66] sm:$0xc]  }
  0x63   :  { %814 = vrot.lane.b32.xlu0 %v813_v8, %s2833_s12  ;;  %v1104_v8 = vld [vmem:[#allocation0 + $0x9] ss:$-1 sm:%s1103_s30]   ;;  %s2861_s30 = smov 57   ;;  %s2890_s12 = smov 5  }
  0x64   :  { %829 = vrot.lane.b32.xlu1 %v828_v9, %s2834_s13  ;;  %v1107_v9 = vld [vmem:[#allocation0 + $0x43] ss:$-1 sm:%s1106_s2]   ;;  %s2866_s2 = smov 52   ;;  %s2872_s13 = smov 46  }
  0x65   :  { %v1109_v13 = vsel %vm107_vm0, %v1107_v9, %v1104_v8 }
  0x66   :  { %v1114_v22 = vsel %vm111_vm1, %v1112_v14, %v1109_v13  ;;  %v1324_v13 = vld [vmem:[#allocation0 + $0x28] sm:$0x3]   ;;  %v1326_v14 = vld [vmem:[#allocation0 + $0x5e] sm:$0xc]  }
  0x67   :  { %846 = vrot.lane.b32.xlu0 %v845_v16, %s2835_s15  ;;  %s2850_s15 = smov 68   ;;  %v1328_v20 = vsel %vm107_vm0, %v1326_v14, %v1324_v13  ;;  %v1528_v13 = vld [vmem:[#allocation0 + $0x66] sm:$0xc]   ;;  %v1539_v14 = vld [vmem:[#allocation0 + $0x10] sm:$0x3]  }
  0x68   :  { %861 = vrot.lane.b32.xlu1 %v860_v17, %s2836_s17  ;;  %v1127_v17 = vld [vmem:[#allocation0 + $0x56] sm:$0xc]   ;;  %s2873_s17 = smov 45  }
  0x69   :  { %v1129_v24 = vsel %vm107_vm0, %v1127_v17, %v1125_v15  ;;  %v1341_v17 = vld [vmem:[#allocation0 + $0x43] ss:$-1 sm:%s1340_s23]   ;;  %s2869_s23 = smov 49  }
  0x6b   :  { %878 = vrot.lane.b32.xlu0 %v877_v26, %s2837_s18  ;;  %v1143_v26 = vld [vmem:[#allocation0 + $0x6c] sm:$0x30]   ;;  %s2891_s18 = smov 4  }
  0x6c   :  { %893 = vrot.lane.b32.xlu1 %v892_v27, %s2838_s19  ;;  %v1145_v32 = vsel %vm111_vm1, %v1143_v26, %v1141_v25  ;;  %v1361_v25 = vld [vmem:[#allocation0 + $0x56] sm:$0xc]   ;;  %v1371_v26 = vld [vmem:[#allocation0] sm:$0x3]   ;;  %s2864_s19 = smov 54  }
  0x6f   :  { %909 = vrot.lane.b32.xlu0 %v908_v34, %s2839_s20  ;;  %v1164_v34 = vsel %vm111_vm1, %v1162_v29, %v1160_v28  ;;  %v1390_v28 = vld [vmem:[#allocation0 + $0x18] sm:$0x3]   ;;  %v1392_v29 = vld [vmem:[#allocation0 + $0x4e] sm:$0xc]  }
  0x70   :  { %931 = vrot.lane.b32.xlu1 %v930_v35, %s2840_s21  ;;  %v1175_v35 = vld [vmem:[#allocation0 + $0x30] sm:$0x3]   ;;  %s2855_s21 = smov 63  }
  0x73   :  { %946 = vrot.lane.b32.xlu0 %v945_v42, %s2841_s22  ;;  %s2851_s22 = smov 67   ;;  %v1179_v42 = vsel %vm107_vm0, %v1177_v36, %v1175_v35  ;;  %v1394_v36 = vsel %vm107_vm0, %v1392_v29, %v1390_v28 }
  0x74   :  { %963 = vrot.lane.b32.xlu1 %v962_v43, %s2842_s25  ;;  %s1574_s25 = smov 12 }
  0x77   :  { %978 = vrot.lane.b32.xlu0 %v977_v50, %s2843_s27  ;;  %s2852_s27 = smov 66   ;;  %v1254_v50 = vld [vmem:[#allocation0] sm:$0x3]  }
  0x78   :  { %995 = vrot.lane.b32.xlu1 %v994_v51, %s2844_s28  ;;  %s1220_s28 = smov 3  ;;  %v1256_v51 = vld [vmem:[#allocation0 + $0x36] sm:$0xc]  }
  0x79   :  { %v1221_v40 = vld [vmem:[#allocation0 + $0x9] ss:$-1 sm:%s1220_s28]   ;;  %s2856_s28 = smov 62  }
  0x7b   :  { %1010 = vrot.lane.b32.xlu0 %v1009_v58, %s2845_s29  ;;  %s1223_s29 = smov 12  ;;  %v1258_v58 = vsel %vm107_vm0, %v1256_v51, %v1254_v50 }
  0x7c   :  { %1026 = vrot.lane.b32.xlu1 %v1025_v59, %s2846_s3  ;;  %v1224_v41 = vld [vmem:[#allocation0 + $0x43] ss:$-1 sm:%s1223_s29]   ;;  %v1260_v59 = vld [vmem:[#allocation0 + $0x6c] sm:$0x30]   ;;  %s1345_s29 = smov 48  ;;  %s1454_s3 = smov 3 }
  0x7d   :  { %v1226_v48 = vsel %vm107_vm0, %v1224_v41, %v1221_v40  ;;  %v1262_v0 = vsel %vm111_vm1, %v1260_v59, %v1258_v58  ;;  %v1488_v58 = vld [vmem:[#allocation0] sm:$0x3]   ;;  %v1490_v59 = vld [vmem:[#allocation0 + $0x36] sm:$0xc]  }
  0x7e   :  { %v1231_v54 = vsel %vm111_vm1, %v1229_v49, %v1226_v48  ;;  %v1455_v48 = vld [vmem:[#allocation0 + $0x9] ss:$-1 sm:%s1454_s3]   ;;  %s2875_s3 = smov 43  }
  0x7f   :  { %1048 = vrot.lane.b32.xlu0 %v1047_v2, %s2847_s5  ;;  %v1279_v2 = vld [vmem:[#allocation0 + $0x84] sm:$0x30]   ;;  %s2889_s5 = smov 6  }
  0x80   :  { %1063 = vrot.lane.b32.xlu1 %v1062_v3, %s2848_s6  ;;  %v1292_v3 = vld [vmem:[#allocation0 + $0x30] sm:$0x3]   ;;  %v1281_v8 = vsel %vm111_vm1, %v1279_v2, %v1277_v1  ;;  %v1492_v2 = vsel %vm107_vm0, %v1490_v59, %v1488_v58  ;;  %s2871_s6 = smov 47   ;;  %v1677_v59 = vld [vmem:[#allocation0 + $0x28] sm:$0x3]  }
  0x81   :  { %v129_v11 = vpop.permute.xlu0 %128  }
  0x82   :  { %2330 = vst.msk [vmem:[%s4522_s1 + $0x6e] ss:$325 sm:$0x3] %vm91_vm2, %v129_v11   ;;  %2331 = vst.msk [vmem:[%s4522_s1 - $0x19c] ss:$325 sm:$0xc] %vm91_vm2, %v129_v11   ;;  %v163_v16 = vpop.permute.xlu1 %162   ;;  %v1309_v11 = vsel %vm107_vm0, %v1307_v7, %v1305_v6 }
  0x83   :  { %1080 = vrot.lane.b32.xlu0 %v1079_v10, %s2849_s11  ;;  %2335 = vst.msk [vmem:[%s4522_s1 + $0x1a1] ss:$-325 sm:$0x3] %vm91_vm2, %v163_v16   ;;  %2336 = vst.msk [vmem:[%s4522_s1 + $0x4ab] ss:$-325 sm:$0xc] %vm91_vm2, %v163_v16   ;;  %v1296_v10 = vsel %vm107_vm0, %v1294_v5, %v1292_v3 }
  0x84   :  { %1095 = vrot.lane.b32.xlu1 %v1094_v12, %s2850_s15  ;;  %s2858_s11 = smov 60   ;;  %s2859_s15 = smov 59   ;;  %v1311_v12 = vld [vmem:[#allocation0 + $0x7c] sm:$0x30]   ;;  %v1494_v3 = vld [vmem:[#allocation0 + $0x6c] sm:$0x30]  }
  0x85   :  { %v114_v23 = vpop.permute.xlu0 %113   ;;  %v1313_v18 = vsel %vm111_vm1, %v1311_v12, %v1309_v11  ;;  %v1509_v5 = vld [vmem:[#allocation0 + $0x4e] sm:$0xc]  }
  0x86   :  { %2327 = vst.msk [vmem:[%s4522_s1 + $0x37] ss:$325 sm:$0x3] %vm91_vm2, %v114_v23   ;;  %2328 = vst.msk [vmem:[%s4522_s1 - $0x1d3] ss:$325 sm:$0xc] %vm91_vm2, %v114_v23   ;;  %v195_v27 = vpop.permute.xlu1 %194  }
  0x87   :  { %2329 = vst.msk [vmem:[%s4522_s1 - $0x3dd] ss:$325 sm:$0x30] %vm91_vm2, %v114_v23   ;;  %1115 = vrot.lane.b32.xlu0 %v1114_v22, %s2851_s22  ;;  %2340 = vst.msk [vmem:[%s4522_s1 + $0x4a] ss:$325 sm:$0x3] %vm91_vm2, %v195_v27  }
  0x88   :  { %2341 = vst.msk [vmem:[%s4522_s1 - $0x1c0] ss:$325 sm:$0xc] %vm91_vm2, %v195_v27   ;;  %1130 = vrot.lane.b32.xlu1 %v1129_v24, %s2852_s27  ;;  %s1337_s22 = smov 3  ;;  %v1346_v22 = vld [vmem:[#allocation0 + $0x7d] ss:$-1 sm:%s1345_s29]  }
  0x89   :  { %v180_v33 = vpop.permute.xlu0 %179   ;;  %v1338_v16 = vld [vmem:[#allocation0 + $0x9] ss:$-1 sm:%s1337_s22]   ;;  %v1359_v23 = vld [vmem:[#allocation0 + $0x20] sm:$0x3]   ;;  %v1373_v27 = vld [vmem:[#allocation0 + $0x36] sm:$0xc]  }
  0x8a   :  { %2337 = vst.msk [vmem:[%s4522_s1 + $0x13] ss:$325 sm:$0x3] %vm91_vm2, %v180_v33   ;;  %2338 = vst.msk [vmem:[%s4522_s1 - $0x1f7] ss:$325 sm:$0xc] %vm91_vm2, %v180_v33   ;;  %v146_v37 = vpop.permute.xlu1 %145   ;;  %v1343_v21 = vsel %vm107_vm0, %v1341_v17, %v1338_v16 }
  0x8b   :  { %2339 = vst.msk [vmem:[%s4522_s1 - $0x401] ss:$325 sm:$0x30] %vm91_vm2, %v180_v33   ;;  %1146 = vrot.lane.b32.xlu0 %v1145_v32, %s2853_s7  ;;  %2332 = vst.msk [vmem:[%s4522_s1 + $0x25] ss:$325 sm:$0x3] %vm91_vm2, %v146_v37   ;;  %v1348_v30 = vsel %vm111_vm1, %v1346_v22, %v1343_v21  ;;  %v1363_v32 = vsel %vm107_vm0, %v1361_v25, %v1359_v23  ;;  %v1375_v33 = vsel %vm107_vm0, %v1373_v27, %v1371_v26 }
  0x8c   :  { %2333 = vst.msk [vmem:[%s4522_s1 - $0x1e5] ss:$325 sm:$0xc] %vm91_vm2, %v146_v37   ;;  %2334 = vst.msk [vmem:[%s4522_s1 - $0x3ef] ss:$325 sm:$0x30] %vm91_vm2, %v146_v37   ;;  %1165 = vrot.lane.b32.xlu1 %v1164_v34, %s2854_s0 }
  0x8d   :  { %v211_v43 = vpop.permute.xlu0 %210   ;;  %s2863_s0 = smov 55   ;;  %v1377_v34 = vld [vmem:[#allocation0 + $0x6c] sm:$0x30]   ;;  %v1396_v37 = vld [vmem:[#allocation0 + $0x84] sm:$0x30]   ;;  %s1646_s29 = smov 12 }
  0x8e   :  { %2342 = vst.msk [vmem:[%s4522_s1 + $0x1] ss:$325 sm:$0x3] %vm91_vm2, %v211_v43   ;;  %2343 = vst.msk [vmem:[%s4522_s1 - $0x209] ss:$325 sm:$0xc] %vm91_vm2, %v211_v43   ;;  %v230_v47 = vpop.permute.xlu1 %229   ;;  %v1379_v40 = vsel %vm111_vm1, %v1377_v34, %v1375_v33 }
  0x8f   :  { %2344 = vst.msk [vmem:[%s4522_s1 - $0x413] ss:$325 sm:$0x30] %vm91_vm2, %v211_v43   ;;  %1180 = vrot.lane.b32.xlu0 %v1179_v42, %s2855_s21  ;;  %2345 = vst.msk [vmem:[%s4522_s1 + $0x38] ss:$325 sm:$0x3] %vm91_vm2, %v230_v47   ;;  %v1398_v42 = vsel %vm111_vm1, %v1396_v37, %v1394_v36 }
  0x90   :  { %2346 = vst.msk [vmem:[%s4522_s1 - $0x1d2] ss:$325 sm:$0xc] %vm91_vm2, %v230_v47   ;;  %2347 = vst.msk [vmem:[%s4522_s1 - $0x3dc] ss:$325 sm:$0x30] %vm91_vm2, %v230_v47   ;;  %1197 = vrot.lane.b32.xlu1 %v1196_v44, %s2856_s28 }
  0x91   :  { %v245_v53 = vpop.permute.xlu0 %244   ;;  %v1409_v43 = vld [vmem:[#allocation0 + $0x30] sm:$0x3]   ;;  %v1411_v44 = vld [vmem:[#allocation0 + $0x66] sm:$0xc]   ;;  %v1428_v47 = vld [vmem:[#allocation0 + $0x7c] sm:$0x30]  }
  0x92   :  { %2348 = vst.msk [vmem:[%s4522_s1 + $0x6f] ss:$325 sm:$0x3] %vm91_vm2, %v245_v53   ;;  %2349 = vst.msk [vmem:[%s4522_s1 - $0x19b] ss:$325 sm:$0xc] %vm91_vm2, %v245_v53   ;;  %v262_v57 = vpop.permute.xlu1 %261   ;;  %v1413_v50 = vsel %vm107_vm0, %v1411_v44, %v1409_v43 }
  0x93   :  { %1212 = vrot.lane.b32.xlu0 %v1211_v52, %s2857_s4  ;;  %2350 = vst.msk [vmem:[%s4522_s1 + $0x26] ss:$325 sm:$0x3] %vm91_vm2, %v262_v57   ;;  %2351 = vst.msk [vmem:[%s4522_s1 - $0x1e4] ss:$325 sm:$0xc] %vm91_vm2, %v262_v57   ;;  %v1430_v52 = vsel %vm111_vm1, %v1428_v47, %v1426_v46 }
  0x94   :  { %2352 = vst.msk [vmem:[%s4522_s1 - $0x3ee] ss:$325 sm:$0x30] %vm91_vm2, %v262_v57   ;;  %1232 = vrot.lane.b32.xlu1 %v1231_v54, %s2858_s11  ;;  %s1457_s4 = smov 12  ;;  %s2867_s11 = smov 51  }
  0x95   :  { %v279_v63 = vpop.permute.xlu0 %278   ;;  %v1458_v49 = vld [vmem:[#allocation0 + $0x43] ss:$-1 sm:%s1457_s4]   ;;  %v1441_v53 = vld [vmem:[#allocation0 + $0x28] sm:$0x3]   ;;  %v1526_v11 = vld [vmem:[#allocation0 + $0x30] sm:$0x3]  }
  0x96   :  { %2353 = vst.msk [vmem:[%s4522_s1 + $0x1a2] ss:$-325 sm:$0x3] %vm91_vm2, %v279_v63   ;;  %2354 = vst.msk [vmem:[%s4522_s1 + $0x4ac] ss:$-325 sm:$0xc] %vm91_vm2, %v279_v63   ;;  %v296_v4 = vpop.permute.xlu1 %295   ;;  %v1460_v56 = vsel %vm107_vm0, %v1458_v49, %v1455_v48 }
  0x97   :  { %1247 = vrot.lane.b32.xlu0 %v1246_v62, %s2859_s15  ;;  %2355 = vst.msk [vmem:[%s4522_s1 + $0x14] ss:$325 sm:$0x3] %vm91_vm2, %v296_v4   ;;  %2356 = vst.msk [vmem:[%s4522_s1 - $0x1f6] ss:$325 sm:$0xc] %vm91_vm2, %v296_v4  }
  0x98   :  { %2357 = vst.msk [vmem:[%s4522_s1 - $0x400] ss:$325 sm:$0x30] %vm91_vm2, %v296_v4   ;;  %1263 = vrot.lane.b32.xlu1 %v1262_v0, %s2860_s24  ;;  %s1462_s15 = smov 48  ;;  %v1443_v54 = vld [vmem:[#allocation0 + $0x5e] sm:$0xc]  }
  0x99   :  { %v311_v9 = vpop.permute.xlu0 %310   ;;  %v1463_v57 = vld [vmem:[#allocation0 + $0x7d] ss:$-1 sm:%s1462_s15]   ;;  %v1445_v60 = vsel %vm107_vm0, %v1443_v54, %v1441_v53  ;;  %v1476_v63 = vld [vmem:[#allocation0 + $0x20] sm:$0x3]   ;;  %s1571_s24 = smov 3  ;;  %s2878_s21 = smov 40  }
  0x9a   :  { %2358 = vst.msk [vmem:[%s4522_s1 + $0x4b] ss:$325 sm:$0x3] %vm91_vm2, %v311_v9   ;;  %2359 = vst.msk [vmem:[%s4522_s1 - $0x1bf] ss:$325 sm:$0xc] %vm91_vm2, %v311_v9   ;;  %v327_v15 = vpop.permute.xlu1 %326   ;;  %v1465_v62 = vsel %vm111_vm1, %v1463_v57, %v1460_v56 }
  0x9b   :  { %1282 = vrot.lane.b32.xlu0 %v1281_v8, %s2861_s30  ;;  %2360 = vst.msk [vmem:[%s4522_s1 + $0x2] ss:$325 sm:$0x3] %vm91_vm2, %v327_v15   ;;  %2361 = vst.msk [vmem:[%s4522_s1 - $0x208] ss:$325 sm:$0xc] %vm91_vm2, %v327_v15   ;;  %v1496_v8 = vsel %vm111_vm1, %v1494_v3, %v1492_v2 }
  0x9c   :  { %2362 = vst.msk [vmem:[%s4522_s1 - $0x412] ss:$325 sm:$0x30] %vm91_vm2, %v327_v15   ;;  %1297 = vrot.lane.b32.xlu1 %v1296_v10, %s2862_s8  ;;  %s2870_s30 = smov 48   ;;  %v1478_v0 = vld [vmem:[#allocation0 + $0x56] sm:$0xc]  }
  0x9d   :  { %v346_v19 = vpop.permute.xlu0 %345   ;;  %v1507_v4 = vld [vmem:[#allocation0 + $0x18] sm:$0x3]   ;;  %v1480_v6 = vsel %vm107_vm0, %v1478_v0, %v1476_v63  ;;  %v1513_v10 = vld [vmem:[#allocation0 + $0x84] sm:$0x30]   ;;  %v1560_v22 = vld [vmem:[#allocation0 + $0x5e] sm:$0xc]  }
  0x9e   :  { %2363 = vst.msk [vmem:[%s4522_s1 + $0x39] ss:$325 sm:$0x3] %vm91_vm2, %v346_v19   ;;  %2364 = vst.msk [vmem:[%s4522_s1 - $0x1d1] ss:$325 sm:$0xc] %vm91_vm2, %v346_v19   ;;  %v361_v24 = vpop.permute.xlu1 %360   ;;  %v1511_v9 = vsel %vm107_vm0, %v1509_v5, %v1507_v4 }
  0x9f   :  { %2365 = vst.msk [vmem:[%s4522_s1 - $0x3db] ss:$325 sm:$0x30] %vm91_vm2, %v346_v19   ;;  %1314 = vrot.lane.b32.xlu0 %v1313_v18, %s2863_s0  ;;  %2366 = vst.msk [vmem:[%s4522_s1 + $0x70] ss:$325 sm:$0x3] %vm91_vm2, %v361_v24   ;;  %v1515_v16 = vsel %vm111_vm1, %v1513_v10, %v1511_v9  ;;  %v1530_v18 = vsel %vm107_vm0, %v1528_v13, %v1526_v11 }
  0xa0   :  { %2367 = vst.msk [vmem:[%s4522_s1 - $0x19a] ss:$325 sm:$0xc] %vm91_vm2, %v361_v24   ;;  %1329 = vrot.lane.b32.xlu1 %v1328_v20, %s2864_s19  ;;  %v1541_v15 = vld [vmem:[#allocation0 + $0x46] sm:$0xc]   ;;  %s1643_s28 = smov 3 }
  0xa1   :  { %v378_v31 = vpop.permute.xlu0 %377   ;;  %v1543_v19 = vsel %vm107_vm0, %v1541_v15, %v1539_v14  ;;  %v1545_v20 = vld [vmem:[#allocation0 + $0x7c] sm:$0x30]   ;;  %v1558_v21 = vld [vmem:[#allocation0 + $0x28] sm:$0x3]   ;;  %v1595_v33 = vld [vmem:[#allocation0 + $0x56] sm:$0xc]  }
  0xa2   :  { %2368 = vst.msk [vmem:[%s4522_s1 + $0x27] ss:$325 sm:$0x3] %vm91_vm2, %v378_v31   ;;  %2369 = vst.msk [vmem:[%s4522_s1 - $0x1e3] ss:$325 sm:$0xc] %vm91_vm2, %v378_v31   ;;  %v395_v35 = vpop.permute.xlu1 %394   ;;  %v1547_v26 = vsel %vm111_vm1, %v1545_v20, %v1543_v19  ;;  %v1562_v28 = vsel %vm107_vm0, %v1560_v22, %v1558_v21 }
  0xa3   :  { %2370 = vst.msk [vmem:[%s4522_s1 - $0x3ed] ss:$325 sm:$0x30] %vm91_vm2, %v378_v31   ;;  %1349 = vrot.lane.b32.xlu0 %v1348_v30, %s2865_s26  ;;  %2371 = vst.msk [vmem:[%s4522_s1 + $0x1a3] ss:$-325 sm:$0x3] %vm91_vm2, %v395_v35  }
  0xa4   :  { %2372 = vst.msk [vmem:[%s4522_s1 + $0x4ad] ss:$-325 sm:$0xc] %vm91_vm2, %v395_v35   ;;  %1364 = vrot.lane.b32.xlu1 %v1363_v32, %s2866_s2  ;;  %s2874_s26 = smov 44   ;;  %v1572_v24 = vld [vmem:[#allocation0 + $0x9] ss:$-1 sm:%s1571_s24]  }
  0xa5   :  { %v412_v41 = vpop.permute.xlu0 %411   ;;  %v1575_v25 = vld [vmem:[#allocation0 + $0x43] ss:$-1 sm:%s1574_s25]   ;;  %s1579_s2 = smov 48  ;;  %v1607_v35 = vld [vmem:[#allocation0 + $0x36] sm:$0xc]   ;;  %s2883_s24 = smov 35  }
  0xa6   :  { %2373 = vst.msk [vmem:[%s4522_s1 + $0x15] ss:$325 sm:$0x3] %vm91_vm2, %v412_v41   ;;  %2374 = vst.msk [vmem:[%s4522_s1 - $0x1f5] ss:$325 sm:$0xc] %vm91_vm2, %v412_v41   ;;  %v427_v45 = vpop.permute.xlu1 %426   ;;  %v1577_v29 = vsel %vm107_vm0, %v1575_v25, %v1572_v24 }
  0xa7   :  { %2375 = vst.msk [vmem:[%s4522_s1 - $0x3ff] ss:$325 sm:$0x30] %vm91_vm2, %v412_v41   ;;  %1380 = vrot.lane.b32.xlu0 %v1379_v40, %s2867_s11  ;;  %2376 = vst.msk [vmem:[%s4522_s1 + $0x4c] ss:$325 sm:$0x3] %vm91_vm2, %v427_v45  }
  0xa8   :  { %2377 = vst.msk [vmem:[%s4522_s1 - $0x1be] ss:$325 sm:$0xc] %vm91_vm2, %v427_v45   ;;  %1399 = vrot.lane.b32.xlu1 %v1398_v42, %s2868_s16  ;;  %v1580_v30 = vld [vmem:[#allocation0 + $0x7d] ss:$-1 sm:%s1579_s2]   ;;  %s2877_s16 = smov 41  }
  0xa9   :  { %v443_v51 = vpop.permute.xlu0 %442   ;;  %v1593_v31 = vld [vmem:[#allocation0 + $0x20] sm:$0x3]   ;;  %v1624_v36 = vld [vmem:[#allocation0 + $0x18] sm:$0x3]   ;;  %v1626_v37 = vld [vmem:[#allocation0 + $0x4e] sm:$0xc]   ;;  %v1582_v38 = vsel %vm111_vm1, %v1580_v30, %v1577_v29 }
  0xaa   :  { %2378 = vst.msk [vmem:[%s4522_s1 + $0x3] ss:$325 sm:$0x3] %vm91_vm2, %v443_v51   ;;  %2379 = vst.msk [vmem:[%s4522_s1 - $0x207] ss:$325 sm:$0xc] %vm91_vm2, %v443_v51   ;;  %v462_v55 = vpop.permute.xlu1 %461   ;;  %v1597_v40 = vsel %vm107_vm0, %v1595_v33, %v1593_v31  ;;  %v1628_v44 = vsel %vm107_vm0, %v1626_v37, %v1624_v36 }
  0xab   :  { %2380 = vst.msk [vmem:[%s4522_s1 - $0x411] ss:$325 sm:$0x30] %vm91_vm2, %v443_v51   ;;  %1414 = vrot.lane.b32.xlu0 %v1413_v50, %s2869_s23  ;;  %2381 = vst.msk [vmem:[%s4522_s1 + $0x3a] ss:$325 sm:$0x3] %vm91_vm2, %v462_v55  }
  0xac   :  { %2382 = vst.msk [vmem:[%s4522_s1 - $0x1d0] ss:$325 sm:$0xc] %vm91_vm2, %v462_v55   ;;  %2383 = vst.msk [vmem:[%s4522_s1 - $0x3da] ss:$325 sm:$0x30] %vm91_vm2, %v462_v55   ;;  %1431 = vrot.lane.b32.xlu1 %v1430_v52, %s2870_s30 }
  0xad   :  { %v477_v61 = vpop.permute.xlu0 %476   ;;  %v1605_v34 = vld [vmem:[#allocation0] sm:$0x3]   ;;  %v1611_v42 = vld [vmem:[#allocation0 + $0x6c] sm:$0x30]   ;;  %v1630_v45 = vld [vmem:[#allocation0 + $0x84] sm:$0x30]  }
  0xae   :  { %2384 = vst.msk [vmem:[%s4522_s1 + $0x71] ss:$325 sm:$0x3] %vm91_vm2, %v477_v61   ;;  %2385 = vst.msk [vmem:[%s4522_s1 - $0x199] ss:$325 sm:$0xc] %vm91_vm2, %v477_v61   ;;  %v494_v1 = vpop.permute.xlu1 %493   ;;  %v1609_v41 = vsel %vm107_vm0, %v1607_v35, %v1605_v34  ;;  %v1632_v50 = vsel %vm111_vm1, %v1630_v45, %v1628_v44 }
  0xaf   :  { %1446 = vrot.lane.b32.xlu0 %v1445_v60, %s2871_s6  ;;  %2386 = vst.msk [vmem:[%s4522_s1 + $0x28] ss:$325 sm:$0x3] %vm91_vm2, %v494_v1   ;;  %2387 = vst.msk [vmem:[%s4522_s1 - $0x1e2] ss:$325 sm:$0xc] %vm91_vm2, %v494_v1   ;;  %v1613_v48 = vsel %vm111_vm1, %v1611_v42, %v1609_v41 }
  0xb0   :  { %2388 = vst.msk [vmem:[%s4522_s1 - $0x3ec] ss:$325 sm:$0x30] %vm91_vm2, %v494_v1   ;;  %1466 = vrot.lane.b32.xlu1 %v1465_v62, %s2872_s13  ;;  %s2879_s30 = smov 39   ;;  %v1658_v46 = vld [vmem:[#allocation0 + $0x10] sm:$0x3]  }
  0xb1   :  { %v511_v7 = vpop.permute.xlu0 %510   ;;  %v1660_v47 = vld [vmem:[#allocation0 + $0x46] sm:$0xc]   ;;  %s2880_s6 = smov 38   ;;  %v1644_v51 = vld [vmem:[#allocation0 + $0x31] ss:$-1 sm:%s1643_s28]   ;;  %s2881_s13 = smov 37  }
  0xb2   :  { %2389 = vst.msk [vmem:[%s4522_s1 + $0x1a4] ss:$-325 sm:$0x3] %vm91_vm2, %v511_v7   ;;  %2390 = vst.msk [vmem:[%s4522_s1 + $0x4ae] ss:$-325 sm:$0xc] %vm91_vm2, %v511_v7   ;;  %v528_v12 = vpop.permute.xlu1 %527   ;;  %v1662_v54 = vsel %vm107_vm0, %v1660_v47, %v1658_v46 }
  0xb3   :  { %1481 = vrot.lane.b32.xlu0 %v1480_v6, %s2873_s17  ;;  %2391 = vst.msk [vmem:[%s4522_s1 + $0x16] ss:$325 sm:$0x3] %vm91_vm2, %v528_v12   ;;  %2392 = vst.msk [vmem:[%s4522_s1 - $0x1f4] ss:$325 sm:$0xc] %vm91_vm2, %v528_v12  }
  0xb4   :  { %2393 = vst.msk [vmem:[%s4522_s1 - $0x3fe] ss:$325 sm:$0x30] %vm91_vm2, %v528_v12   ;;  %1497 = vrot.lane.b32.xlu1 %v1496_v8, %s2874_s26  ;;  %v1647_v52 = vld [vmem:[#allocation0 + $0x6b] ss:$-1 sm:%s1646_s29]   ;;  %s2882_s17 = smov 36  }
  0xb5   :  { %v543_v17 = vpop.permute.xlu0 %542   ;;  %v1664_v55 = vld [vmem:[#allocation0 + $0x7c] sm:$0x30]   ;;  %v1690_v56 = vld [vmem:[#allocation0 + $0x8] sm:$0x3]   ;;  %v1649_v58 = vsel %vm107_vm0, %v1647_v52, %v1644_v51  ;;  %v1696_v63 = vld [vmem:[#allocation0 + $0x74] sm:$0x30]  }
  0xb6   :  { %2394 = vst.msk [vmem:[%s4522_s1 + $0x4d] ss:$325 sm:$0x3] %vm91_vm2, %v543_v17   ;;  %2395 = vst.msk [vmem:[%s4522_s1 - $0x1bd] ss:$325 sm:$0xc] %vm91_vm2, %v543_v17   ;;  %v559_v23 = vpop.permute.xlu1 %558   ;;  %v1666_v61 = vsel %vm111_vm1, %v1664_v55, %v1662_v54 }
  0xb7   :  { %1516 = vrot.lane.b32.xlu0 %v1515_v16, %s2875_s3  ;;  %2396 = vst.msk [vmem:[%s4522_s1 + $0x4] ss:$325 sm:$0x3] %vm91_vm2, %v559_v23   ;;  %2397 = vst.msk [vmem:[%s4522_s1 - $0x206] ss:$325 sm:$0xc] %vm91_vm2, %v559_v23  }
  0xb8   :  { %2398 = vst.msk [vmem:[%s4522_s1 - $0x410] ss:$325 sm:$0x30] %vm91_vm2, %v559_v23   ;;  %1531 = vrot.lane.b32.xlu1 %v1530_v18, %s2876_s10  ;;  %v1692_v57 = vld [vmem:[#allocation0 + $0x3e] sm:$0xc]   ;;  %s2884_s2 = smov 34  }
  0xb9   :  { %v581_v27 = vpop.permute.xlu0 %580   ;;  %v1679_v62 = vld [vmem:[#allocation0 + $0x5e] sm:$0xc]   ;;  %v1694_v1 = vsel %vm107_vm0, %v1692_v57, %v1690_v56  ;;  %v1723_v3 = vld [vmem:[#allocation0 + $0x36] sm:$0xc]   ;;  %v2098_v4 = vld [vmem:[#allocation0 + $0x10] sm:$0x3]  }
  0xba   :  { %2399 = vst.msk [vmem:[%s4522_s1 + $0x180] ss:$-325 sm:$0x3] %vm91_vm2, %v581_v27   ;;  %2400 = vst.msk [vmem:[%s4522_s1 + $0x48a] ss:$-325 sm:$0xc] %vm91_vm2, %v581_v27   ;;  %v596_v32 = vpop.permute.xlu1 %595   ;;  %v1681_v11 = vsel %vm107_vm0, %v1679_v62, %v1677_v59  ;;  %v1698_v16 = vsel %vm111_vm1, %v1696_v63, %v1694_v1 }
  0xbb   :  { %2401 = vst.msk [vmem:[%s4522_s1 + $0x794] ss:$-325 sm:$0x30] %vm91_vm2, %v581_v27   ;;  %1548 = vrot.lane.b32.xlu0 %v1547_v26, %s2877_s16  ;;  %2402 = vst.msk [vmem:[%s4522_s1 + $0x72] ss:$325 sm:$0x3] %vm91_vm2, %v596_v32  }
  0xbc   :  { %2403 = vst.msk [vmem:[%s4522_s1 - $0x198] ss:$325 sm:$0xc] %vm91_vm2, %v596_v32   ;;  %1563 = vrot.lane.b32.xlu1 %v1562_v28, %s2878_s21  ;;  %v1721_v2 = vld [vmem:[#allocation0] sm:$0x3]   ;;  %s2200_s7 = smov 3 }
  0xbd   :  { %v613_v39 = vpop.permute.xlu0 %612   ;;  %v1709_v5 = vld [vmem:[#allocation0 + $0x20] sm:$0x3]   ;;  %v1711_v6 = vld [vmem:[#allocation0 + $0x56] sm:$0xc]   ;;  %v1727_v7 = vld [vmem:[#allocation0 + $0x6c] sm:$0x30]   ;;  %v1725_v17 = vsel %vm107_vm0, %v1723_v3, %v1721_v2 }
  0xbe   :  { %2404 = vst.msk [vmem:[%s4522_s1 + $0x29] ss:$325 sm:$0x3] %vm91_vm2, %v613_v39   ;;  %2405 = vst.msk [vmem:[%s4522_s1 - $0x1e1] ss:$325 sm:$0xc] %vm91_vm2, %v613_v39   ;;  %v628_v43 = vpop.permute.xlu1 %627   ;;  %v1713_v28 = vsel %vm107_vm0, %v1711_v6, %v1709_v5  ;;  %v1729_v29 = vsel %vm111_vm1, %v1727_v7, %v1725_v17 }
  0xbf   :  { %2406 = vst.msk [vmem:[%s4522_s1 - $0x3eb] ss:$325 sm:$0x30] %vm91_vm2, %v613_v39   ;;  %1583 = vrot.lane.b32.xlu0 %v1582_v38, %s2879_s30  ;;  %2407 = vst.msk [vmem:[%s4522_s1 + $0x60] ss:$325 sm:$0x3] %vm91_vm2, %v628_v43  }
  0xc0   :  { %2408 = vst.msk [vmem:[%s4522_s1 - $0x1aa] ss:$325 sm:$0xc] %vm91_vm2, %v628_v43   ;;  %1598 = vrot.lane.b32.xlu1 %v1597_v40, %s2880_s6  ;;  %v2100_v8 = vld [vmem:[#allocation0 + $0x46] sm:$0xc]   ;;  %s2203_s8 = smov 12 }
  0xc1   :  { %v645_v49 = vpop.permute.xlu0 %644   ;;  %v2108_v9 = vld [vmem:[#allocation0 + $0x18] sm:$0x3]   ;;  %v2110_v10 = vld [vmem:[#allocation0 + $0x4e] sm:$0xc]   ;;  %v2104_v12 = vld [vmem:[#allocation0 + $0x7c] sm:$0x30]   ;;  %v2102_v22 = vsel %vm107_vm0, %v2100_v8, %v2098_v4 }
  0xc2   :  { %2409 = vst.msk [vmem:[%s4522_s1 + $0x17] ss:$325 sm:$0x3] %vm91_vm2, %v645_v49   ;;  %2410 = vst.msk [vmem:[%s4522_s1 - $0x1f3] ss:$325 sm:$0xc] %vm91_vm2, %v645_v49   ;;  %v660_v53 = vpop.permute.xlu1 %659   ;;  %v2112_v23 = vsel %vm107_vm0, %v2110_v10, %v2108_v9  ;;  %v2106_v32 = vsel %vm111_vm1, %v2104_v12, %v2102_v22 }
  0xc3   :  { %2411 = vst.msk [vmem:[%s4522_s1 - $0x3fd] ss:$325 sm:$0x30] %vm91_vm2, %v645_v49   ;;  %1614 = vrot.lane.b32.xlu0 %v1613_v48, %s2881_s13  ;;  %2412 = vst.msk [vmem:[%s4522_s1 + $0x4e] ss:$325 sm:$0x3] %vm91_vm2, %v660_v53  }
  0xc4   :  { %2413 = vst.msk [vmem:[%s4522_s1 - $0x1bc] ss:$325 sm:$0xc] %vm91_vm2, %v660_v53   ;;  %1633 = vrot.lane.b32.xlu1 %v1632_v50, %s2882_s17  ;;  %v2114_v13 = vld [vmem:[#allocation0 + $0x84] sm:$0x30]   ;;  %s2208_s15 = smov 3 }
  0xc5   :  { %v676_v60 = vpop.permute.xlu0 %675   ;;  %v2136_v14 = vld [vmem:[#allocation0 + $0x28] sm:$0x3]   ;;  %v2138_v18 = vld [vmem:[#allocation0 + $0x5e] sm:$0xc]   ;;  %v2142_v19 = vld [vmem:[#allocation0 + $0x30] sm:$0x3]   ;;  %v2116_v33 = vsel %vm111_vm1, %v2114_v13, %v2112_v23 }
  0xc6   :  { %2414 = vst.msk [vmem:[%s4522_s1 + $0x5] ss:$325 sm:$0x3] %vm91_vm2, %v676_v60   ;;  %2415 = vst.msk [vmem:[%s4522_s1 - $0x205] ss:$325 sm:$0xc] %vm91_vm2, %v676_v60   ;;  %v698_v0 = vpop.permute.xlu1 %697   ;;  %v2140_v34 = vsel %vm107_vm0, %v2138_v18, %v2136_v14  ;;  %v2118_v48 = vsel %vm2117_vm3, %v2116_v33, %v2106_v32 }
  0xc7   :  { %2416 = vst.msk [vmem:[%s4522_s1 - $0x40f] ss:$325 sm:$0x30] %vm91_vm2, %v676_v60   ;;  %1650 = vrot.lane.b32.xlu0 %v1649_v58, %s2883_s24  ;;  %2417 = vst.msk [vmem:[%s4522_s1 + $0x181] ss:$-325 sm:$0x3] %vm91_vm2, %v698_v0  }
  0xc8   :  { %2418 = vst.msk [vmem:[%s4522_s1 + $0x48b] ss:$-325 sm:$0xc] %vm91_vm2, %v698_v0   ;;  %2419 = vst.msk [vmem:[%s4522_s1 + $0x795] ss:$-325 sm:$0x30] %vm91_vm2, %v698_v0   ;;  %1667 = vrot.lane.b32.xlu1 %v1666_v61, %s2884_s2 }
  0xc9   :  { %v713_v15 = vpop.permute.xlu0 %712   ;;  %v2144_v20 = vld [vmem:[#allocation0 + $0x66] sm:$0xc]   ;;  %v2164_v25 = vld [vmem:[#allocation0 + $0x3e] sm:$0xc]   ;;  %v2172_v26 = vld [vmem:[#allocation0 + $0x10] sm:$0x3]  }
  0xca   :  { %2420 = vst.msk [vmem:[%s4522_s1 + $0x73] ss:$325 sm:$0x3] %vm91_vm2, %v713_v15   ;;  %2421 = vst.msk [vmem:[%s4522_s1 - $0x197] ss:$325 sm:$0xc] %vm91_vm2, %v713_v15   ;;  %v730_v21 = vpop.permute.xlu1 %729   ;;  %v2146_v35 = vsel %vm107_vm0, %v2144_v20, %v2142_v19 }
  0xcb   :  { %v2162_v24 = vld [vmem:[#allocation0 + $0x8] sm:$0x3]   ;;  %1682 = vrot.lane.b32.xlu0 %v1681_v11, %s2885_s9  ;;  %2422 = vst.msk [vmem:[%s4522_s1 + $0x2a] ss:$325 sm:$0x3] %vm91_vm2, %v730_v21   ;;  %s2211_s16 = smov 12  ;;  %v2148_v49 = vsel %vm2147_vm4, %v2146_v35, %v2140_v34 }
  0xcc   :  { %2423 = vst.msk [vmem:[%s4522_s1 - $0x1e0] ss:$325 sm:$0xc] %vm91_vm2, %v730_v21   ;;  %2424 = vst.msk [vmem:[%s4522_s1 - $0x3ea] ss:$325 sm:$0x30] %vm91_vm2, %v730_v21   ;;  %v2166_v40 = vsel %vm107_vm0, %v2164_v25, %v2162_v24 }
  0xcd   :  { %v2174_v27 = vld [vmem:[#allocation0 + $0x46] sm:$0xc]   ;;  %s2886_s17 = smov 32   ;;  %v2168_v30 = vld [vmem:[#allocation0 + $0x74] sm:$0x30]   ;;  %v745_v31 = vpop.permute.xlu0 %744   ;;  %s2887_s22 = smov 31  }
  0xce   :  { %1699 = vrot.lane.b32.xlu1 %v1698_v16, %s2886_s17  ;;  %v2178_v36 = vld [vmem:[#allocation0 + $0x7c] sm:$0x30]   ;;  %2425 = vst.msk [vmem:[%s4522_s1 + $0x61] ss:$325 sm:$0x3] %vm91_vm2, %v745_v31   ;;  %v762_v39 = vpop.permute.xlu1 %761   ;;  %v2176_v41 = vsel %vm107_vm0, %v2174_v27, %v2172_v26  ;;  %s2888_s29 = smov 30   ;;  %v2170_v51 = vsel %vm111_vm1, %v2168_v30, %v2166_v40 }
  0xcf   :  { %v2201_v37 = vld [vmem:[#allocation0 + $0x21] ss:$-1 sm:%s2200_s7]   ;;  %2426 = vst.msk [vmem:[%s4522_s1 - $0x1a9] ss:$325 sm:$0xc] %vm91_vm2, %v745_v31   ;;  %1714 = vrot.lane.b32.xlu0 %v1713_v28, %s2887_s22  ;;  %v2180_v52 = vsel %vm111_vm1, %v2178_v36, %v2176_v41  ;;  %s1753_s23 = smov 3 }
  0xd0   :  { %v2229_v38 = vld [vmem:[#allocation0] sm:$0x3]   ;;  %v2204_v42 = vld [vmem:[#allocation0 + $0x5b] ss:$-1 sm:%s2203_s8]   ;;  %v2209_v43 = vld [vmem:[#allocation0 + $0x29] ss:$-1 sm:%s2208_s15]   ;;  %v2182_v0 = vsel %vm2181_vm5, %v2180_v52, %v2170_v51 }
  0xd1   :  { %v2212_v44 = vld [vmem:[#allocation0 + $0x63] ss:$-1 sm:%s2211_s16]   ;;  %2427 = vst.msk [vmem:[%s4522_s1 + $0x18] ss:$325 sm:$0x3] %vm91_vm2, %v762_v39   ;;  %v777_v50 = vpop.permute.xlu0 %776   ;;  %v2206_v54 = vsel %vm107_vm0, %v2204_v42, %v2201_v37  ;;  %s1756_s24 = smov 12 }
  0xd2   :  { %2428 = vst.msk [vmem:[%s4522_s1 - $0x1f2] ss:$325 sm:$0xc] %vm91_vm2, %v762_v39   ;;  %2429 = vst.msk [vmem:[%s4522_s1 - $0x3fc] ss:$325 sm:$0x30] %vm91_vm2, %v762_v39   ;;  %1730 = vrot.lane.b32.xlu1 %v1729_v29, %s2888_s29  ;;  %v793_v53 = vpop.permute.xlu1 %792   ;;  %v2214_v55 = vsel %vm107_vm0, %v2212_v44, %v2209_v43 }
  0xd3   :  { %v2231_v45 = vld [vmem:[#allocation0 + $0x36] sm:$0xc]   ;;  %v2239_v46 = vld [vmem:[#allocation0 + $0x8] sm:$0x3]   ;;  %v2241_v47 = vld [vmem:[#allocation0 + $0x3e] sm:$0xc]   ;;  %2119 = vrot.lane.b32.xlu0 %v2118_v48, %s2889_s5  ;;  %v2216_v2 = vsel %vm2215_vm6, %v2214_v55, %v2206_v54 }
  0xd4   :  { %2430 = vst.msk [vmem:[%s4522_s1 + $0x4f] ss:$325 sm:$0x3] %vm91_vm2, %v777_v50   ;;  %2431 = vst.msk [vmem:[%s4522_s1 - $0x1bb] ss:$325 sm:$0xc] %vm91_vm2, %v777_v50   ;;  %v2233_v56 = vsel %vm107_vm0, %v2231_v45, %v2229_v38  ;;  %v2243_v58 = vsel %vm107_vm0, %v2241_v47, %v2239_v46 }
  0xd5   :  { %v2235_v57 = vld [vmem:[#allocation0 + $0x6c] sm:$0x30]   ;;  %v2245_v59 = vld [vmem:[#allocation0 + $0x74] sm:$0x30]   ;;  %v2273_v62 = vld [vmem:[#allocation0 + $0x20] sm:$0x3]   ;;  %v815_v1 = vpop.permute.xlu0 %814  }
  0xd6   :  { %v2267_v60 = vld [vmem:[#allocation0 + $0x18] sm:$0x3]   ;;  %2432 = vst.msk [vmem:[%s4522_s1 + $0x6] ss:$325 sm:$0x3] %vm91_vm2, %v793_v53   ;;  %2149 = vrot.lane.b32.xlu1 %v2148_v49, %s2890_s12  ;;  %v2237_v3 = vsel %vm111_vm1, %v2235_v57, %v2233_v56  ;;  %v2247_v4 = vsel %vm111_vm1, %v2245_v59, %v2243_v58  ;;  %v830_v5 = vpop.permute.xlu1 %829   ;;  %s2892_s25 = smov 3  }
  0xd7   :  { %2433 = vst.msk [vmem:[%s4522_s1 - $0x204] ss:$325 sm:$0xc] %vm91_vm2, %v793_v53   ;;  %2434 = vst.msk [vmem:[%s4522_s1 - $0x40e] ss:$325 sm:$0x30] %vm91_vm2, %v793_v53   ;;  %2183 = vrot.lane.b32.xlu0 %v2182_v0, %s2891_s18  ;;  %v2249_v8 = vsel %vm2248_vm7, %v2247_v4, %v2237_v3 }
  0xd8   :  { %v2269_v61 = vld [vmem:[#allocation0 + $0x4e] sm:$0xc]   ;;  %v2275_v63 = vld [vmem:[#allocation0 + $0x56] sm:$0xc]   ;;  %v1757_v16 = vld [vmem:[#allocation0 + $0x6b] ss:$-1 sm:%s1756_s24]  }
  0xd9   :  { %2435 = vst.msk [vmem:[%s4522_s1 + $0x182] ss:$-325 sm:$0x3] %vm91_vm2, %v815_v1   ;;  %2436 = vst.msk [vmem:[%s4522_s1 + $0x48c] ss:$-325 sm:$0xc] %vm91_vm2, %v815_v1   ;;  %v2271_v6 = vsel %vm107_vm0, %v2269_v61, %v2267_v60  ;;  %v2277_v7 = vsel %vm107_vm0, %v2275_v63, %v2273_v62  ;;  %v847_v9 = vpop.permute.xlu0 %846  }
  0xda   :  { %2437 = vst.msk [vmem:[%s4522_s1 + $0x796] ss:$-325 sm:$0x30] %vm91_vm2, %v815_v1   ;;  %2438 = vst.msk [vmem:[%s4522_s1 + $0x74] ss:$325 sm:$0x3] %vm91_vm2, %v830_v5   ;;  %2217 = vrot.lane.b32.xlu1 %v2216_v2, %s2892_s25  ;;  %v2279_v10 = vsel %vm2278_vm8, %v2277_v7, %v2271_v6  ;;  %v862_v14 = vpop.permute.xlu1 %861  }
  0xdb   :  { %2439 = vst.msk [vmem:[%s4522_s1 - $0x196] ss:$325 sm:$0xc] %vm91_vm2, %v830_v5   ;;  %v1740_v11 = vld [vmem:[#allocation0 + $0x18] sm:$0x3]   ;;  %s2893_s3 = smov 2  }
  0xdc   :  { %v1742_v12 = vld [vmem:[#allocation0 + $0x4e] sm:$0xc]   ;;  %2440 = vst.msk [vmem:[%s4522_s1 + $0x2b] ss:$325 sm:$0x3] %vm91_vm2, %v847_v9   ;;  %2250 = vrot.lane.b32.xlu0 %v2249_v8, %s2893_s3  ;;  %s2894_s8 = smov 1  }
  0xdd   :  { %v1768_v13 = vld [vmem:[#allocation0 + $0x10] sm:$0x3]   ;;  %2441 = vst.msk [vmem:[%s4522_s1 - $0x1df] ss:$325 sm:$0xc] %vm91_vm2, %v847_v9   ;;  %v1744_v18 = vsel %vm107_vm0, %v1742_v12, %v1740_v11  ;;  %v879_v19 = vpop.permute.xlu0 %878   ;;  %s2895_s0 = smov 29  }
  0xde   :  { %2442 = vst.msk [vmem:[%s4522_s1 - $0x3e9] ss:$325 sm:$0x30] %vm91_vm2, %v847_v9   ;;  %v1754_v15 = vld [vmem:[#allocation0 + $0x31] ss:$-1 sm:%s1753_s23]   ;;  %2280 = vrot.lane.b32.xlu1 %v2279_v10, %s2894_s8  ;;  %v894_v24 = vpop.permute.xlu1 %893   ;;  %s2896_s19 = smov 28  }
  0xdf   :  { %v1770_v17 = vld [vmem:[#allocation0 + $0x46] sm:$0xc]   ;;  %2443 = vst.msk [vmem:[%s4522_s1 + $0x62] ss:$325 sm:$0x3] %vm91_vm2, %v862_v14   ;;  %v1759_v20 = vsel %vm107_vm0, %v1757_v16, %v1754_v15  ;;  %s2897_s26 = smov 27  }
  0xe0   :  { %2444 = vst.msk [vmem:[%s4522_s1 - $0x1a8] ss:$325 sm:$0xc] %vm91_vm2, %v862_v14   ;;  %v1772_v21 = vsel %vm107_vm0, %v1770_v17, %v1768_v13  ;;  %v1774_v22 = vld [vmem:[#allocation0 + $0x7c] sm:$0x30]   ;;  %1745 = vrot.lane.b32.xlu0 %v1744_v18, %s2895_s0  ;;  %s2898_s4 = smov 26  }
  0xe1   :  { %v1787_v23 = vld [vmem:[#allocation0 + $0x28] sm:$0x3]   ;;  %2445 = vst.msk [vmem:[%s4522_s1 + $0x19] ss:$325 sm:$0x3] %vm91_vm2, %v879_v19   ;;  %v1776_v28 = vsel %vm111_vm1, %v1774_v22, %v1772_v21  ;;  %v910_v29 = vpop.permute.xlu0 %909   ;;  %s1863_s9 = smov 3 }
  0xe2   :  { %2446 = vst.msk [vmem:[%s4522_s1 - $0x1f1] ss:$325 sm:$0xc] %vm91_vm2, %v879_v19   ;;  %2447 = vst.msk [vmem:[%s4522_s1 - $0x3fb] ss:$325 sm:$0x30] %vm91_vm2, %v879_v19   ;;  %1760 = vrot.lane.b32.xlu1 %v1759_v20, %s2896_s19  ;;  %v932_v34 = vpop.permute.xlu1 %931  }
  0xe3   :  { %v1789_v25 = vld [vmem:[#allocation0 + $0x5e] sm:$0xc]   ;;  %v1800_v26 = vld [vmem:[#allocation0 + $0x8] sm:$0x3]   ;;  %v1806_v32 = vld [vmem:[#allocation0 + $0x74] sm:$0x30]  }
  0xe4   :  { %v1802_v27 = vld [vmem:[#allocation0 + $0x3e] sm:$0xc]   ;;  %2448 = vst.msk [vmem:[%s4522_s1 + $0x50] ss:$325 sm:$0x3] %vm91_vm2, %v894_v24   ;;  %v1791_v30 = vsel %vm107_vm0, %v1789_v25, %v1787_v23  ;;  %1777 = vrot.lane.b32.xlu0 %v1776_v28, %s2897_s26  ;;  %s1866_s10 = smov 12 }
  0xe5   :  { %2449 = vst.msk [vmem:[%s4522_s1 - $0x1ba] ss:$325 sm:$0xc] %vm91_vm2, %v894_v24   ;;  %v1804_v31 = vsel %vm107_vm0, %v1802_v27, %v1800_v26  ;;  %v1819_v33 = vld [vmem:[#allocation0 + $0x20] sm:$0x3]   ;;  %v947_v39 = vpop.permute.xlu0 %946   ;;  %s2899_s11 = smov 25  }
  0xe6   :  { %2450 = vst.msk [vmem:[%s4522_s1 + $0x7] ss:$325 sm:$0x3] %vm91_vm2, %v910_v29   ;;  %2451 = vst.msk [vmem:[%s4522_s1 - $0x203] ss:$325 sm:$0xc] %vm91_vm2, %v910_v29   ;;  %1792 = vrot.lane.b32.xlu1 %v1791_v30, %s2898_s4  ;;  %v1808_v38 = vsel %vm111_vm1, %v1806_v32, %v1804_v31  ;;  %v964_v43 = vpop.permute.xlu1 %963  }
  0xe7   :  { %2452 = vst.msk [vmem:[%s4522_s1 - $0x40d] ss:$325 sm:$0x30] %vm91_vm2, %v910_v29   ;;  %v1821_v35 = vld [vmem:[#allocation0 + $0x56] sm:$0xc]   ;;  %s2900_s17 = smov 24  }
  0xe8   :  { %v1831_v36 = vld [vmem:[#allocation0] sm:$0x3]   ;;  %v1833_v37 = vld [vmem:[#allocation0 + $0x36] sm:$0xc]   ;;  %v1823_v40 = vsel %vm107_vm0, %v1821_v35, %v1819_v33  ;;  %v1837_v42 = vld [vmem:[#allocation0 + $0x6c] sm:$0x30]   ;;  %1809 = vrot.lane.b32.xlu0 %v1808_v38, %s2899_s11 }
  0xe9   :  { %2453 = vst.msk [vmem:[%s4522_s1 + $0x183] ss:$-325 sm:$0x3] %vm91_vm2, %v932_v34   ;;  %2454 = vst.msk [vmem:[%s4522_s1 + $0x48d] ss:$-325 sm:$0xc] %vm91_vm2, %v932_v34   ;;  %v1835_v41 = vsel %vm107_vm0, %v1833_v37, %v1831_v36  ;;  %v979_v49 = vpop.permute.xlu0 %978  }
  0xea   :  { %2455 = vst.msk [vmem:[%s4522_s1 + $0x797] ss:$-325 sm:$0x30] %vm91_vm2, %v932_v34   ;;  %2456 = vst.msk [vmem:[%s4522_s1 + $0x75] ss:$325 sm:$0x3] %vm91_vm2, %v947_v39   ;;  %1824 = vrot.lane.b32.xlu1 %v1823_v40, %s2900_s17  ;;  %v1839_v48 = vsel %vm111_vm1, %v1837_v42, %v1835_v41  ;;  %v996_v53 = vpop.permute.xlu1 %995  }
  0xeb   :  { %2457 = vst.msk [vmem:[%s4522_s1 - $0x195] ss:$325 sm:$0xc] %vm91_vm2, %v947_v39   ;;  %v1850_v44 = vld [vmem:[#allocation0 + $0x18] sm:$0x3]   ;;  %s2901_s22 = smov 23  }
  0xec   :  { %v1852_v45 = vld [vmem:[#allocation0 + $0x4e] sm:$0xc]   ;;  %2458 = vst.msk [vmem:[%s4522_s1 + $0x2c] ss:$325 sm:$0x3] %vm91_vm2, %v964_v43   ;;  %1840 = vrot.lane.b32.xlu0 %v1839_v48, %s2901_s22  ;;  %s2902_s29 = smov 22  }
  0xed   :  { %2459 = vst.msk [vmem:[%s4522_s1 - $0x1de] ss:$325 sm:$0xc] %vm91_vm2, %v964_v43   ;;  %2460 = vst.msk [vmem:[%s4522_s1 - $0x3e8] ss:$325 sm:$0x30] %vm91_vm2, %v964_v43   ;;  %v1854_v50 = vsel %vm107_vm0, %v1852_v45, %v1850_v44  ;;  %v1011_v59 = vpop.permute.xlu0 %1010  }
  0xee   :  { %v1878_v46 = vld [vmem:[#allocation0 + $0x10] sm:$0x3]   ;;  %v1880_v47 = vld [vmem:[#allocation0 + $0x46] sm:$0xc]   ;;  %v1884_v55 = vld [vmem:[#allocation0 + $0x7c] sm:$0x30]   ;;  %1855 = vrot.lane.b32.xlu1 %v1854_v50, %s2902_s29  ;;  %v1027_v63 = vpop.permute.xlu1 %1026  }
  0xef   :  { %v1864_v51 = vld [vmem:[#allocation0 + $0x31] ss:$-1 sm:%s1863_s9]   ;;  %2461 = vst.msk [vmem:[%s4522_s1 + $0x63] ss:$325 sm:$0x3] %vm91_vm2, %v979_v49   ;;  %v1882_v54 = vsel %vm107_vm0, %v1880_v47, %v1878_v46  ;;  %s2903_s5 = smov 21  }
  0xf0   :  { %v1867_v52 = vld [vmem:[#allocation0 + $0x6b] ss:$-1 sm:%s1866_s10]   ;;  %2462 = vst.msk [vmem:[%s4522_s1 - $0x1a7] ss:$325 sm:$0xc] %vm91_vm2, %v979_v49   ;;  %v1886_v60 = vsel %vm111_vm1, %v1884_v55, %v1882_v54  ;;  %s2904_s12 = smov 20  }
  0xf1   :  { %2463 = vst.msk [vmem:[%s4522_s1 + $0x1a] ss:$325 sm:$0x3] %vm91_vm2, %v996_v53   ;;  %2464 = vst.msk [vmem:[%s4522_s1 - $0x1f0] ss:$325 sm:$0xc] %vm91_vm2, %v996_v53   ;;  %v1869_v58 = vsel %vm107_vm0, %v1867_v52, %v1864_v51  ;;  %v1049_v5 = vpop.permute.xlu0 %1048  }
  0xf2   :  { %2465 = vst.msk [vmem:[%s4522_s1 - $0x3fa] ss:$325 sm:$0x30] %vm91_vm2, %v996_v53   ;;  %v1910_v56 = vld [vmem:[#allocation0 + $0x8] sm:$0x3]   ;;  %1870 = vrot.lane.b32.xlu0 %v1869_v58, %s2903_s5  ;;  %1887 = vrot.lane.b32.xlu1 %v1886_v60, %s2904_s12  ;;  %v1064_v9 = vpop.permute.xlu1 %1063   ;;  %s2905_s18 = smov 19  }
  0xf3   :  { %v1912_v57 = vld [vmem:[#allocation0 + $0x3e] sm:$0xc]   ;;  %v1897_v61 = vld [vmem:[#allocation0 + $0x28] sm:$0x3]   ;;  %v1916_v1 = vld [vmem:[#allocation0 + $0x74] sm:$0x30]  }
  0xf4   :  { %v1899_v62 = vld [vmem:[#allocation0 + $0x5e] sm:$0xc]   ;;  %2466 = vst.msk [vmem:[%s4522_s1 + $0x51] ss:$325 sm:$0x3] %vm91_vm2, %v1011_v59   ;;  %v1914_v0 = vsel %vm107_vm0, %v1912_v57, %v1910_v56  ;;  %s1973_s23 = smov 3 }
  0xf5   :  { %2467 = vst.msk [vmem:[%s4522_s1 - $0x1b9] ss:$325 sm:$0xc] %vm91_vm2, %v1011_v59   ;;  %2468 = vst.msk [vmem:[%s4522_s1 + $0x8] ss:$325 sm:$0x3] %vm91_vm2, %v1027_v63   ;;  %v1901_v4 = vsel %vm107_vm0, %v1899_v62, %v1897_v61  ;;  %v1918_v6 = vsel %vm111_vm1, %v1916_v1, %v1914_v0  ;;  %v1081_v13 = vpop.permute.xlu0 %1080  }
  0xf6   :  { %2469 = vst.msk [vmem:[%s4522_s1 - $0x202] ss:$325 sm:$0xc] %vm91_vm2, %v1027_v63   ;;  %2470 = vst.msk [vmem:[%s4522_s1 - $0x40c] ss:$325 sm:$0x30] %vm91_vm2, %v1027_v63   ;;  %1902 = vrot.lane.b32.xlu0 %v1901_v4, %s2905_s18  ;;  %v1096_v18 = vpop.permute.xlu1 %1095  }
  0xf7   :  { %v1941_v2 = vld [vmem:[#allocation0] sm:$0x3]   ;;  %v1943_v3 = vld [vmem:[#allocation0 + $0x36] sm:$0xc]   ;;  %v1947_v11 = vld [vmem:[#allocation0 + $0x6c] sm:$0x30]  }
  0xf8   :  { %v1929_v7 = vld [vmem:[#allocation0 + $0x20] sm:$0x3]   ;;  %v1931_v8 = vld [vmem:[#allocation0 + $0x56] sm:$0xc]   ;;  %v1945_v10 = vsel %vm107_vm0, %v1943_v3, %v1941_v2  ;;  %s1976_s24 = smov 12  ;;  %s2906_s25 = smov 18  }
  0xf9   :  { %2471 = vst.msk [vmem:[%s4522_s1 + $0x184] ss:$-325 sm:$0x3] %vm91_vm2, %v1049_v5   ;;  %2472 = vst.msk [vmem:[%s4522_s1 + $0x48e] ss:$-325 sm:$0xc] %vm91_vm2, %v1049_v5   ;;  %1919 = vrot.lane.b32.xlu1 %v1918_v6, %s2906_s25  ;;  %v1933_v12 = vsel %vm107_vm0, %v1931_v8, %v1929_v7  ;;  %v1949_v14 = vsel %vm111_vm1, %v1947_v11, %v1945_v10  ;;  %v1116_v23 = vpop.permute.xlu0 %1115  }
  0xfa   :  { %2473 = vst.msk [vmem:[%s4522_s1 + $0x798] ss:$-325 sm:$0x30] %vm91_vm2, %v1049_v5   ;;  %2474 = vst.msk [vmem:[%s4522_s1 + $0x76] ss:$325 sm:$0x3] %vm91_vm2, %v1064_v9   ;;  %v1131_v28 = vpop.permute.xlu1 %1130  }
  0xfb   :  { %2475 = vst.msk [vmem:[%s4522_s1 - $0x194] ss:$325 sm:$0xc] %vm91_vm2, %v1064_v9   ;;  %v1960_v15 = vld [vmem:[#allocation0 + $0x18] sm:$0x3]   ;;  %s2907_s3 = smov 17  }
  0xfc   :  { %v1962_v16 = vld [vmem:[#allocation0 + $0x4e] sm:$0xc]   ;;  %2476 = vst.msk [vmem:[%s4522_s1 + $0x2d] ss:$325 sm:$0x3] %vm91_vm2, %v1081_v13   ;;  %1934 = vrot.lane.b32.xlu0 %v1933_v12, %s2907_s3  ;;  %s2908_s8 = smov 16  }
  0xfd   :  { %v1988_v17 = vld [vmem:[#allocation0 + $0x10] sm:$0x3]   ;;  %2477 = vst.msk [vmem:[%s4522_s1 - $0x1dd] ss:$325 sm:$0xc] %vm91_vm2, %v1081_v13   ;;  %1950 = vrot.lane.b32.xlu1 %v1949_v14, %s2908_s8  ;;  %v1964_v22 = vsel %vm107_vm0, %v1962_v16, %v1960_v15  ;;  %s2909_s0 = smov 15   ;;  %v1147_v35 = vpop.permute.xlu0 %1146  }
  0xfe   :  { %2478 = vst.msk [vmem:[%s4522_s1 - $0x3e7] ss:$325 sm:$0x30] %vm91_vm2, %v1081_v13   ;;  %v1974_v19 = vld [vmem:[#allocation0 + $0x31] ss:$-1 sm:%s1973_s23]   ;;  %s2910_s19 = smov 14   ;;  %v1166_v41 = vpop.permute.xlu1 %1165  }
  0xff   :  { %v1977_v20 = vld [vmem:[#allocation0 + $0x6b] ss:$-1 sm:%s1976_s24]   ;;  %2479 = vst.msk [vmem:[%s4522_s1 + $0x64] ss:$325 sm:$0x3] %vm91_vm2, %v1096_v18   ;;  %s2911_s3 = smov 13  }
 0x100   :  { %v1990_v21 = vld [vmem:[#allocation0 + $0x46] sm:$0xc]   ;;  %2480 = vst.msk [vmem:[%s4522_s1 - $0x1a6] ss:$325 sm:$0xc] %vm91_vm2, %v1096_v18   ;;  %v1979_v24 = vsel %vm107_vm0, %v1977_v20, %v1974_v19  ;;  %1965 = vrot.lane.b32.xlu0 %v1964_v22, %s2909_s0  ;;  %s2912_s10 = smov 12  }
 0x101   :  { %v1992_v25 = vsel %vm107_vm0, %v1990_v21, %v1988_v17  ;;  %v1994_v26 = vld [vmem:[#allocation0 + $0x7c] sm:$0x30]   ;;  %v2007_v27 = vld [vmem:[#allocation0 + $0x28] sm:$0x3]   ;;  %1980 = vrot.lane.b32.xlu1 %v1979_v24, %s2910_s19  ;;  %v2026_v33 = vld [vmem:[#allocation0 + $0x74] sm:$0x30]   ;;  %v1181_v46 = vpop.permute.xlu0 %1180  }
 0x102   :  { %2481 = vst.msk [vmem:[%s4522_s1 + $0x160] ss:$-325 sm:$0x3] %vm91_vm2, %v1116_v23   ;;  %2482 = vst.msk [vmem:[%s4522_s1 + $0x46a] ss:$-325 sm:$0xc] %vm91_vm2, %v1116_v23   ;;  %v1996_v32 = vsel %vm111_vm1, %v1994_v26, %v1992_v25  ;;  %v1198_v50 = vpop.permute.xlu1 %1197  }
 0x103   :  { %2483 = vst.msk [vmem:[%s4522_s1 + $0x774] ss:$-325 sm:$0x30] %vm91_vm2, %v1116_v23   ;;  %v2009_v29 = vld [vmem:[#allocation0 + $0x5e] sm:$0xc]   ;;  %s2083_s0 = smov 3 }
 0x104   :  { %v2020_v30 = vld [vmem:[#allocation0 + $0x8] sm:$0x3]   ;;  %v2022_v31 = vld [vmem:[#allocation0 + $0x3e] sm:$0xc]   ;;  %v2011_v36 = vsel %vm107_vm0, %v2009_v29, %v2007_v27  ;;  %v94_v39 = vld [vmem:[#allocation0 + $0x38] sm:$0x3]   ;;  %1997 = vrot.lane.b32.xlu0 %v1996_v32, %s2911_s3 }
 0x105   :  { %2484 = vst.msk [vmem:[%s4522_s1 + $0x52] ss:$325 sm:$0x3] %vm91_vm2, %v1131_v28   ;;  %2485 = vst.msk [vmem:[%s4522_s1 - $0x1b8] ss:$325 sm:$0xc] %vm91_vm2, %v1131_v28   ;;  %v2024_v37 = vsel %vm107_vm0, %v2022_v31, %v2020_v30  ;;  %2012 = vrot.lane.b32.xlu1 %v2011_v36, %s2912_s10  ;;  %v1213_v54 = vpop.permute.xlu0 %1212  }
 0x106   :  { %v2039_v34 = vld [vmem:[#allocation0 + $0x20] sm:$0x3]   ;;  %v99_v40 = vld [vmem:[#allocation0 + $0x70] sm:$0x3]   ;;  %v2041_v42 = vld [vmem:[#allocation0 + $0x56] sm:$0xc]   ;;  %v2028_v45 = vsel %vm111_vm1, %v2026_v33, %v2024_v37  ;;  %v1233_v58 = vpop.permute.xlu1 %1232  }
 0x107   :  { %v90_v38 = vld [vmem:[#allocation0] sm:$0x3]   ;;  %2486 = vst.msk [vmem:[%s4522_s1 + $0x9] ss:$325 sm:$0x3] %vm91_vm2, %v1147_v35   ;;  %v2043_v47 = vsel %vm107_vm0, %v2041_v42, %v2039_v34  ;;  %s2086_s15 = smov 12 }
 0x108   :  { %2487 = vst.msk [vmem:[%s4522_s1 - $0x201] ss:$325 sm:$0xc] %vm91_vm2, %v1147_v35   ;;  %2488 = vst.msk [vmem:[%s4522_s1 - $0x40b] ss:$325 sm:$0x30] %vm91_vm2, %v1147_v35  }
 0x109   :  { %v2051_v43 = vld [vmem:[#allocation0] sm:$0x3]   ;;  %v2053_v44 = vld [vmem:[#allocation0 + $0x36] sm:$0xc]   ;;  %v2057_v49 = vld [vmem:[#allocation0 + $0x6c] sm:$0x30]   ;;  %v1248_v60 = vpop.permute.xlu0 %1247  }
 0x10a   :  { %92 = vst.msk [vmem:[%s4522_s1] ss:$325 sm:$0x3] %vm91_vm2, %v90_v38   ;;  %2325 = vst.msk [vmem:[%s4522_s1 + $0x80] ss:$325 sm:$0x3] %vm91_vm2, %v94_v39   ;;  %v2055_v48 = vsel %vm107_vm0, %v2053_v44, %v2051_v43  ;;  %v1264_v61 = vpop.permute.xlu1 %1263  }
 0x10b   :  { %2326 = vst.msk [vmem:[%s4522_s1 + $0x100] ss:$325 sm:$0x3] %vm91_vm2, %v99_v40   ;;  %2489 = vst.msk [vmem:[%s4522_s1 + $0x40] ss:$325 sm:$0x3] %vm91_vm2, %v1166_v41   ;;  %v2059_v53 = vsel %vm111_vm1, %v2057_v49, %v2055_v48 }
 0x10c   :  { %2490 = vst.msk [vmem:[%s4522_s1 - $0x1ca] ss:$325 sm:$0xc] %vm91_vm2, %v1166_v41   ;;  %2491 = vst.msk [vmem:[%s4522_s1 - $0x3d4] ss:$325 sm:$0x30] %vm91_vm2, %v1166_v41  }
 0x10d   :  { %2492 = vst.msk [vmem:[%s4522_s1 + $0x77] ss:$325 sm:$0x3] %vm91_vm2, %v1181_v46   ;;  %2493 = vst.msk [vmem:[%s4522_s1 - $0x193] ss:$325 sm:$0xc] %vm91_vm2, %v1181_v46   ;;  %v1283_v62 = vpop.permute.xlu0 %1282  }
 0x10e   :  { %v2070_v51 = vld [vmem:[#allocation0 + $0x18] sm:$0x3]   ;;  %v2072_v52 = vld [vmem:[#allocation0 + $0x4e] sm:$0xc]   ;;  %s2913_s16 = smov 11   ;;  %s2914_s23 = smov 10   ;;  %v1298_v63 = vpop.permute.xlu1 %1297  }
 0x10f   :  { %2029 = vrot.lane.b32.xlu0 %v2028_v45, %s2913_s16  ;;  %2494 = vst.msk [vmem:[%s4522_s1 + $0x2e] ss:$325 sm:$0x3] %vm91_vm2, %v1198_v50   ;;  %2495 = vst.msk [vmem:[%s4522_s1 - $0x1dc] ss:$325 sm:$0xc] %vm91_vm2, %v1198_v50   ;;  %2044 = vrot.lane.b32.xlu1 %v2043_v47, %s2914_s23  ;;  %v2074_v55 = vsel %vm107_vm0, %v2072_v52, %v2070_v51 }
 0x110   :  { %2496 = vst.msk [vmem:[%s4522_s1 - $0x3e6] ss:$325 sm:$0x30] %vm91_vm2, %v1198_v50   ;;  %v2084_v56 = vld [vmem:[#allocation0 + $0x31] ss:$-1 sm:%s2083_s0]   ;;  %s2915_s28 = smov 9  }
 0x111   :  { %v2087_v57 = vld [vmem:[#allocation0 + $0x6b] ss:$-1 sm:%s2086_s15]   ;;  %2497 = vst.msk [vmem:[%s4522_s1 + $0x65] ss:$325 sm:$0x3] %vm91_vm2, %v1213_v54   ;;  %s2916_s6 = smov 8   ;;  %v1315_v0 = vpop.permute.xlu0 %1314  }
 0x112   :  { %2498 = vst.msk [vmem:[%s4522_s1 - $0x1a5] ss:$325 sm:$0xc] %vm91_vm2, %v1213_v54   ;;  %2499 = vst.msk [vmem:[%s4522_s1 + $0x161] ss:$-325 sm:$0x3] %vm91_vm2, %v1233_v58   ;;  %v2089_v59 = vsel %vm107_vm0, %v2087_v57, %v2084_v56  ;;  %v1330_v1 = vpop.permute.xlu1 %1329  }
 0x113   :  { %2060 = vrot.lane.b32.xlu0 %v2059_v53, %s2915_s28  ;;  %2500 = vst.msk [vmem:[%s4522_s1 + $0x46b] ss:$-325 sm:$0xc] %vm91_vm2, %v1233_v58   ;;  %2501 = vst.msk [vmem:[%s4522_s1 + $0x775] ss:$-325 sm:$0x30] %vm91_vm2, %v1233_v58   ;;  %2075 = vrot.lane.b32.xlu1 %v2074_v55, %s2916_s6 }
 0x114   :  { %2502 = vst.msk [vmem:[%s4522_s1 + $0x53] ss:$325 sm:$0x3] %vm91_vm2, %v1248_v60   ;;  %2503 = vst.msk [vmem:[%s4522_s1 - $0x1b7] ss:$325 sm:$0xc] %vm91_vm2, %v1248_v60  }
 0x115   :  { %s2917_s11 = smov 7   ;;  %2504 = vst.msk [vmem:[%s4522_s1 + $0xa] ss:$325 sm:$0x3] %vm91_vm2, %v1264_v61   ;;  %v1350_v2 = vpop.permute.xlu0 %1349   ;;  %vm2224_vm0 = vcmask 56344   ;;  %vm2252_vm1 = vcmask 15360  }
 0x116   :  { %2505 = vst.msk [vmem:[%s4522_s1 - $0x200] ss:$325 sm:$0xc] %vm91_vm2, %v1264_v61   ;;  %2506 = vst.msk [vmem:[%s4522_s1 - $0x40a] ss:$325 sm:$0x30] %vm91_vm2, %v1264_v61   ;;  %v1365_v3 = vpop.permute.xlu1 %1364  }
 0x117   :  { %2090 = vrot.lane.b32.xlu0 %v2089_v59, %s2917_s11  ;;  %2507 = vst.msk [vmem:[%s4522_s1 + $0x41] ss:$325 sm:$0x3] %vm91_vm2, %v1283_v62   ;;  %2508 = vst.msk [vmem:[%s4522_s1 - $0x1c9] ss:$325 sm:$0xc] %vm91_vm2, %v1283_v62  }
 0x118   :  { %2509 = vst.msk [vmem:[%s4522_s1 - $0x3d3] ss:$325 sm:$0x30] %vm91_vm2, %v1283_v62   ;;  %2510 = vst.msk [vmem:[%s4522_s1 + $0x78] ss:$325 sm:$0x3] %vm91_vm2, %v1298_v63  }
 0x119   :  { %2511 = vst.msk [vmem:[%s4522_s1 - $0x192] ss:$325 sm:$0xc] %vm91_vm2, %v1298_v63   ;;  %2512 = vst.msk [vmem:[%s4522_s1 + $0x2f] ss:$325 sm:$0x3] %vm91_vm2, %v1315_v0   ;;  %v1381_v4 = vpop.permute.xlu0 %1380  }
 0x11a   :  { %2513 = vst.msk [vmem:[%s4522_s1 - $0x1db] ss:$325 sm:$0xc] %vm91_vm2, %v1315_v0   ;;  %2514 = vst.msk [vmem:[%s4522_s1 - $0x3e5] ss:$325 sm:$0x30] %vm91_vm2, %v1315_v0   ;;  %v1400_v5 = vpop.permute.xlu1 %1399  }
 0x11b   :  { %2515 = vst.msk [vmem:[%s4522_s1 + $0x66] ss:$325 sm:$0x3] %vm91_vm2, %v1330_v1   ;;  %2516 = vst.msk [vmem:[%s4522_s1 - $0x1a4] ss:$325 sm:$0xc] %vm91_vm2, %v1330_v1  }
 0x11c   :  { %2517 = vst.msk [vmem:[%s4522_s1 + $0x162] ss:$-325 sm:$0x3] %vm91_vm2, %v1350_v2   ;;  %2518 = vst.msk [vmem:[%s4522_s1 + $0x46c] ss:$-325 sm:$0xc] %vm91_vm2, %v1350_v2  }
 0x11d   :  { %2519 = vst.msk [vmem:[%s4522_s1 + $0x776] ss:$-325 sm:$0x30] %vm91_vm2, %v1350_v2   ;;  %2520 = vst.msk [vmem:[%s4522_s1 + $0x54] ss:$325 sm:$0x3] %vm91_vm2, %v1365_v3   ;;  %v1415_v6 = vpop.permute.xlu0 %1414  }
 0x11e   :  { %2521 = vst.msk [vmem:[%s4522_s1 - $0x1b6] ss:$325 sm:$0xc] %vm91_vm2, %v1365_v3   ;;  %2522 = vst.msk [vmem:[%s4522_s1 + $0xb] ss:$325 sm:$0x3] %vm91_vm2, %v1381_v4   ;;  %v1432_v7 = vpop.permute.xlu1 %1431  }
 0x11f   :  { %2523 = vst.msk [vmem:[%s4522_s1 - $0x1ff] ss:$325 sm:$0xc] %vm91_vm2, %v1381_v4   ;;  %2524 = vst.msk [vmem:[%s4522_s1 - $0x409] ss:$325 sm:$0x30] %vm91_vm2, %v1381_v4  }
 0x120   :  { %2525 = vst.msk [vmem:[%s4522_s1 + $0x42] ss:$325 sm:$0x3] %vm91_vm2, %v1400_v5   ;;  %2526 = vst.msk [vmem:[%s4522_s1 - $0x1c8] ss:$325 sm:$0xc] %vm91_vm2, %v1400_v5  }
 0x121   :  { %2527 = vst.msk [vmem:[%s4522_s1 - $0x3d2] ss:$325 sm:$0x30] %vm91_vm2, %v1400_v5   ;;  %2528 = vst.msk [vmem:[%s4522_s1 + $0x79] ss:$325 sm:$0x3] %vm91_vm2, %v1415_v6   ;;  %v1447_v8 = vpop.permute.xlu0 %1446  }
 0x122   :  { %2529 = vst.msk [vmem:[%s4522_s1 - $0x191] ss:$325 sm:$0xc] %vm91_vm2, %v1415_v6   ;;  %2530 = vst.msk [vmem:[%s4522_s1 + $0x30] ss:$325 sm:$0x3] %vm91_vm2, %v1432_v7   ;;  %v1467_v9 = vpop.permute.xlu1 %1466  }
 0x123   :  { %2531 = vst.msk [vmem:[%s4522_s1 - $0x1da] ss:$325 sm:$0xc] %vm91_vm2, %v1432_v7   ;;  %2532 = vst.msk [vmem:[%s4522_s1 - $0x3e4] ss:$325 sm:$0x30] %vm91_vm2, %v1432_v7  }
 0x124   :  { %2533 = vst.msk [vmem:[%s4522_s1 + $0x67] ss:$325 sm:$0x3] %vm91_vm2, %v1447_v8   ;;  %2534 = vst.msk [vmem:[%s4522_s1 - $0x1a3] ss:$325 sm:$0xc] %vm91_vm2, %v1447_v8  }
 0x125   :  { %2535 = vst.msk [vmem:[%s4522_s1 + $0x163] ss:$-325 sm:$0x3] %vm91_vm2, %v1467_v9   ;;  %2536 = vst.msk [vmem:[%s4522_s1 + $0x46d] ss:$-325 sm:$0xc] %vm91_vm2, %v1467_v9   ;;  %v1482_v10 = vpop.permute.xlu0 %1481  }
 0x126   :  { %2537 = vst.msk [vmem:[%s4522_s1 + $0x777] ss:$-325 sm:$0x30] %vm91_vm2, %v1467_v9   ;;  %2538 = vst.msk [vmem:[%s4522_s1 + $0x55] ss:$325 sm:$0x3] %vm91_vm2, %v1482_v10   ;;  %v1498_v11 = vpop.permute.xlu1 %1497  }
 0x127   :  { %2539 = vst.msk [vmem:[%s4522_s1 - $0x1b5] ss:$325 sm:$0xc] %vm91_vm2, %v1482_v10   ;;  %2540 = vst.msk [vmem:[%s4522_s1 + $0xc] ss:$325 sm:$0x3] %vm91_vm2, %v1498_v11  }
 0x128   :  { %2541 = vst.msk [vmem:[%s4522_s1 - $0x1fe] ss:$325 sm:$0xc] %vm91_vm2, %v1498_v11   ;;  %2542 = vst.msk [vmem:[%s4522_s1 - $0x408] ss:$325 sm:$0x30] %vm91_vm2, %v1498_v11  }
 0x129   :  { %v1517_v12 = vpop.permute.xlu0 %1516   ;;  %vm2259_vm3 = vcmask 56336   ;;  %vm2282_vm4 = vcmask 7168   ;;  %vm2287_vm5 = vcmask 56328  }
 0x12a   :  { %2543 = vst.msk [vmem:[%s4522_s1 + $0x43] ss:$325 sm:$0x3] %vm91_vm2, %v1517_v12   ;;  %2544 = vst.msk [vmem:[%s4522_s1 - $0x1c7] ss:$325 sm:$0xc] %vm91_vm2, %v1517_v12   ;;  %v1532_v13 = vpop.permute.xlu1 %1531  }
 0x12b   :  { %2545 = vst.msk [vmem:[%s4522_s1 - $0x3d1] ss:$325 sm:$0x30] %vm91_vm2, %v1517_v12   ;;  %2546 = vst.msk [vmem:[%s4522_s1 + $0x7a] ss:$325 sm:$0x3] %vm91_vm2, %v1532_v13  }
 0x12c   :  { %2547 = vst.msk [vmem:[%s4522_s1 - $0x190] ss:$325 sm:$0xc] %vm91_vm2, %v1532_v13  }
 0x12d   :  { %v1549_v14 = vpop.permute.xlu0 %1548  }
 0x12e   :  { %2548 = vst.msk [vmem:[%s4522_s1 + $0x31] ss:$325 sm:$0x3] %vm91_vm2, %v1549_v14   ;;  %2549 = vst.msk [vmem:[%s4522_s1 - $0x1d9] ss:$325 sm:$0xc] %vm91_vm2, %v1549_v14   ;;  %v1564_v15 = vpop.permute.xlu1 %1563  }
 0x12f   :  { %2550 = vst.msk [vmem:[%s4522_s1 - $0x3e3] ss:$325 sm:$0x30] %vm91_vm2, %v1549_v14   ;;  %2551 = vst.msk [vmem:[%s4522_s1 + $0x68] ss:$325 sm:$0x3] %vm91_vm2, %v1564_v15  }
 0x130   :  { %2552 = vst.msk [vmem:[%s4522_s1 - $0x1a2] ss:$325 sm:$0xc] %vm91_vm2, %v1564_v15  }
 0x131   :  { %v1584_v16 = vpop.permute.xlu0 %1583  }
 0x132   :  { %2553 = vst.msk [vmem:[%s4522_s1 + $0x164] ss:$-325 sm:$0x3] %vm91_vm2, %v1584_v16   ;;  %2554 = vst.msk [vmem:[%s4522_s1 + $0x46e] ss:$-325 sm:$0xc] %vm91_vm2, %v1584_v16   ;;  %v1599_v17 = vpop.permute.xlu1 %1598  }
 0x133   :  { %2555 = vst.msk [vmem:[%s4522_s1 + $0x778] ss:$-325 sm:$0x30] %vm91_vm2, %v1584_v16   ;;  %2556 = vst.msk [vmem:[%s4522_s1 + $0x56] ss:$325 sm:$0x3] %vm91_vm2, %v1599_v17  }
 0x134   :  { %2557 = vst.msk [vmem:[%s4522_s1 - $0x1b4] ss:$325 sm:$0xc] %vm91_vm2, %v1599_v17  }
 0x135   :  { %v1615_v18 = vpop.permute.xlu0 %1614  }
 0x136   :  { %2558 = vst.msk [vmem:[%s4522_s1 + $0xd] ss:$325 sm:$0x3] %vm91_vm2, %v1615_v18   ;;  %2559 = vst.msk [vmem:[%s4522_s1 - $0x1fd] ss:$325 sm:$0xc] %vm91_vm2, %v1615_v18   ;;  %v1634_v19 = vpop.permute.xlu1 %1633  }
 0x137   :  { %2560 = vst.msk [vmem:[%s4522_s1 - $0x407] ss:$325 sm:$0x30] %vm91_vm2, %v1615_v18   ;;  %2561 = vst.msk [vmem:[%s4522_s1 + $0x44] ss:$325 sm:$0x3] %vm91_vm2, %v1634_v19  }
 0x138   :  { %2562 = vst.msk [vmem:[%s4522_s1 - $0x1c6] ss:$325 sm:$0xc] %vm91_vm2, %v1634_v19   ;;  %2563 = vst.msk [vmem:[%s4522_s1 - $0x3d0] ss:$325 sm:$0x30] %vm91_vm2, %v1634_v19  }
 0x139   :  { %v1651_v20 = vpop.permute.xlu0 %1650  }
 0x13a   :  { %2564 = vst.msk [vmem:[%s4522_s1 + $0x1c0] ss:$-325 sm:$0x3] %vm91_vm2, %v1651_v20   ;;  %2565 = vst.msk [vmem:[%s4522_s1 + $0x4ca] ss:$-325 sm:$0xc] %vm91_vm2, %v1651_v20   ;;  %v1668_v21 = vpop.permute.xlu1 %1667  }
 0x13b   :  { %2566 = vst.msk [vmem:[%s4522_s1 + $0x32] ss:$325 sm:$0x3] %vm91_vm2, %v1668_v21   ;;  %2567 = vst.msk [vmem:[%s4522_s1 - $0x1d8] ss:$325 sm:$0xc] %vm91_vm2, %v1668_v21  }
 0x13c   :  { %2568 = vst.msk [vmem:[%s4522_s1 - $0x3e2] ss:$325 sm:$0x30] %vm91_vm2, %v1668_v21  }
 0x13d   :  { %v1683_v22 = vpop.permute.xlu0 %1682  }
 0x13e   :  { %2569 = vst.msk [vmem:[%s4522_s1 + $0x69] ss:$325 sm:$0x3] %vm91_vm2, %v1683_v22   ;;  %2570 = vst.msk [vmem:[%s4522_s1 - $0x1a1] ss:$325 sm:$0xc] %vm91_vm2, %v1683_v22  }
 0x140   :  { %v1700_v23 = vpop.permute.xlu1 %1699  }
 0x141   :  { %2571 = vst.msk [vmem:[%s4522_s1 + $0x20] ss:$325 sm:$0x3] %vm91_vm2, %v1700_v23   ;;  %2572 = vst.msk [vmem:[%s4522_s1 - $0x1ea] ss:$325 sm:$0xc] %vm91_vm2, %v1700_v23   ;;  %v1715_v24 = vpop.permute.xlu0 %1714  }
 0x142   :  { %2573 = vst.msk [vmem:[%s4522_s1 - $0x3f4] ss:$325 sm:$0x30] %vm91_vm2, %v1700_v23   ;;  %2574 = vst.msk [vmem:[%s4522_s1 + $0x57] ss:$325 sm:$0x3] %vm91_vm2, %v1715_v24  }
 0x143   :  { %2575 = vst.msk [vmem:[%s4522_s1 - $0x1b3] ss:$325 sm:$0xc] %vm91_vm2, %v1715_v24  }
 0x144   :  { %v1731_v25 = vpop.permute.xlu1 %1730  }
 0x145   :  { %2576 = vst.msk [vmem:[%s4522_s1 + $0xe] ss:$325 sm:$0x3] %vm91_vm2, %v1731_v25   ;;  %2577 = vst.msk [vmem:[%s4522_s1 - $0x1fc] ss:$325 sm:$0xc] %vm91_vm2, %v1731_v25   ;;  %v2120_v26 = vpop.permute.xlu0 %2119  }
 0x146   :  { %2578 = vst.msk [vmem:[%s4522_s1 - $0x406] ss:$325 sm:$0x30] %vm91_vm2, %v1731_v25  }
 0x147   :  { %2634 = vst.msk [vmem:[%s4522_s1 + $0x36] ss:$325 sm:$0x3] %vm2121_vm9, %v2120_v26   ;;  %2635 = vst.msk [vmem:[%s4522_s1 - $0x1d4] ss:$325 sm:$0xc] %vm2121_vm9, %v2120_v26  }
 0x148   :  { %2636 = vst.msk [vmem:[%s4522_s1 - $0x3de] ss:$325 sm:$0x30] %vm2121_vm9, %v2120_v26   ;;  %v2150_v27 = vpop.permute.xlu1 %2149  }
 0x149   :  { %2637 = vst.msk [vmem:[%s4522_s1 + $0x36] ss:$325 sm:$0x3] %vm2128_vm10, %v2120_v26   ;;  %2638 = vst.msk [vmem:[%s4522_s1 - $0x1d4] ss:$325 sm:$0xc] %vm2128_vm10, %v2120_v26   ;;  %v2184_v28 = vpop.permute.xlu0 %2183  }
 0x14a   :  { %2639 = vst.msk [vmem:[%s4522_s1 - $0x3de] ss:$325 sm:$0x30] %vm2128_vm10, %v2120_v26  }
 0x14b   :  { %2640 = vst.msk [vmem:[%s4522_s1 + $0x6d] ss:$325 sm:$0x3] %vm2151_vm11, %v2150_v27   ;;  %2641 = vst.msk [vmem:[%s4522_s1 - $0x19d] ss:$325 sm:$0xc] %vm2151_vm11, %v2150_v27  }
 0x14c   :  { %2642 = vst.msk [vmem:[%s4522_s1 + $0x6d] ss:$325 sm:$0x3] %vm2156_vm12, %v2150_v27   ;;  %2643 = vst.msk [vmem:[%s4522_s1 - $0x19d] ss:$325 sm:$0xc] %vm2156_vm12, %v2150_v27   ;;  %v2218_v29 = vpop.permute.xlu1 %2217  }
 0x14d   :  { %2644 = vst.msk [vmem:[%s4522_s1 + $0x24] ss:$325 sm:$0x3] %vm2185_vm13, %v2184_v28   ;;  %2645 = vst.msk [vmem:[%s4522_s1 - $0x1e6] ss:$325 sm:$0xc] %vm2185_vm13, %v2184_v28  }
 0x14e   :  { %2646 = vst.msk [vmem:[%s4522_s1 - $0x3f0] ss:$325 sm:$0x30] %vm2185_vm13, %v2184_v28   ;;  %v2251_v30 = vpop.permute.xlu0 %2250  }
 0x14f   :  { %2647 = vst.msk [vmem:[%s4522_s1 + $0x24] ss:$325 sm:$0x3] %vm2192_vm14, %v2184_v28   ;;  %2648 = vst.msk [vmem:[%s4522_s1 - $0x1e6] ss:$325 sm:$0xc] %vm2192_vm14, %v2184_v28  }
 0x150   :  { %2649 = vst.msk [vmem:[%s4522_s1 - $0x3f0] ss:$325 sm:$0x30] %vm2192_vm14, %v2184_v28   ;;  %v2281_v31 = vpop.permute.xlu1 %2280  }
 0x151   :  { %2650 = vst.msk [vmem:[%s4522_s1 + $0x1a0] ss:$-325 sm:$0x3] %vm2219_vm15, %v2218_v29   ;;  %2651 = vst.msk [vmem:[%s4522_s1 + $0x4aa] ss:$-325 sm:$0xc] %vm2219_vm15, %v2218_v29  }
 0x152   :  { %2652 = vst.msk [vmem:[%s4522_s1 + $0x1a0] ss:$-325 sm:$0x3] %vm2224_vm0, %v2218_v29   ;;  %2653 = vst.msk [vmem:[%s4522_s1 + $0x4aa] ss:$-325 sm:$0xc] %vm2224_vm0, %v2218_v29   ;;  %v1746_v32 = vpop.permute.xlu0 %1745  }
 0x153   :  { %2654 = vst.msk [vmem:[%s4522_s1 + $0x12] ss:$325 sm:$0x3] %vm2252_vm1, %v2251_v30   ;;  %2655 = vst.msk [vmem:[%s4522_s1 - $0x1f8] ss:$325 sm:$0xc] %vm2252_vm1, %v2251_v30  }
 0x154   :  { %2656 = vst.msk [vmem:[%s4522_s1 - $0x402] ss:$325 sm:$0x30] %vm2252_vm1, %v2251_v30   ;;  %v1761_v33 = vpop.permute.xlu1 %1760  }
 0x155   :  { %2657 = vst.msk [vmem:[%s4522_s1 + $0x12] ss:$325 sm:$0x3] %vm2259_vm3, %v2251_v30   ;;  %2658 = vst.msk [vmem:[%s4522_s1 - $0x1f8] ss:$325 sm:$0xc] %vm2259_vm3, %v2251_v30  }
 0x156   :  { %2659 = vst.msk [vmem:[%s4522_s1 - $0x402] ss:$325 sm:$0x30] %vm2259_vm3, %v2251_v30   ;;  %v1778_v34 = vpop.permute.xlu0 %1777  }
 0x157   :  { %2660 = vst.msk [vmem:[%s4522_s1 + $0x49] ss:$325 sm:$0x3] %vm2282_vm4, %v2281_v31   ;;  %2661 = vst.msk [vmem:[%s4522_s1 - $0x1c1] ss:$325 sm:$0xc] %vm2282_vm4, %v2281_v31  }
 0x158   :  { %2662 = vst.msk [vmem:[%s4522_s1 + $0x49] ss:$325 sm:$0x3] %vm2287_vm5, %v2281_v31   ;;  %2663 = vst.msk [vmem:[%s4522_s1 - $0x1c1] ss:$325 sm:$0xc] %vm2287_vm5, %v2281_v31   ;;  %v1793_v35 = vpop.permute.xlu1 %1792  }
 0x159   :  { %2579 = vst.msk [vmem:[%s4522_s1 + $0x45] ss:$325 sm:$0x3] %vm91_vm2, %v1746_v32   ;;  %2580 = vst.msk [vmem:[%s4522_s1 - $0x1c5] ss:$325 sm:$0xc] %vm91_vm2, %v1746_v32  }
 0x15a   :  { %2581 = vst.msk [vmem:[%s4522_s1 + $0x1c1] ss:$-325 sm:$0x3] %vm91_vm2, %v1761_v33   ;;  %2582 = vst.msk [vmem:[%s4522_s1 + $0x4cb] ss:$-325 sm:$0xc] %vm91_vm2, %v1761_v33   ;;  %v1810_v36 = vpop.permute.xlu0 %1809  }
 0x15b   :  { %2583 = vst.msk [vmem:[%s4522_s1 + $0x33] ss:$325 sm:$0x3] %vm91_vm2, %v1778_v34   ;;  %2584 = vst.msk [vmem:[%s4522_s1 - $0x1d7] ss:$325 sm:$0xc] %vm91_vm2, %v1778_v34  }
 0x15c   :  { %2585 = vst.msk [vmem:[%s4522_s1 - $0x3e1] ss:$325 sm:$0x30] %vm91_vm2, %v1778_v34   ;;  %2586 = vst.msk [vmem:[%s4522_s1 + $0x6a] ss:$325 sm:$0x3] %vm91_vm2, %v1793_v35   ;;  %v1825_v37 = vpop.permute.xlu1 %1824  }
 0x15d   :  { %2587 = vst.msk [vmem:[%s4522_s1 - $0x1a0] ss:$325 sm:$0xc] %vm91_vm2, %v1793_v35   ;;  %2588 = vst.msk [vmem:[%s4522_s1 + $0x21] ss:$325 sm:$0x3] %vm91_vm2, %v1810_v36  }
 0x15e   :  { %2589 = vst.msk [vmem:[%s4522_s1 - $0x1e9] ss:$325 sm:$0xc] %vm91_vm2, %v1810_v36   ;;  %2590 = vst.msk [vmem:[%s4522_s1 - $0x3f3] ss:$325 sm:$0x30] %vm91_vm2, %v1810_v36   ;;  %v1841_v38 = vpop.permute.xlu0 %1840  }
 0x15f   :  { %2591 = vst.msk [vmem:[%s4522_s1 + $0x58] ss:$325 sm:$0x3] %vm91_vm2, %v1825_v37   ;;  %2592 = vst.msk [vmem:[%s4522_s1 - $0x1b2] ss:$325 sm:$0xc] %vm91_vm2, %v1825_v37  }
 0x160   :  { %2593 = vst.msk [vmem:[%s4522_s1 + $0xf] ss:$325 sm:$0x3] %vm91_vm2, %v1841_v38   ;;  %2594 = vst.msk [vmem:[%s4522_s1 - $0x1fb] ss:$325 sm:$0xc] %vm91_vm2, %v1841_v38   ;;  %v1856_v39 = vpop.permute.xlu1 %1855  }
 0x161   :  { %2595 = vst.msk [vmem:[%s4522_s1 - $0x405] ss:$325 sm:$0x30] %vm91_vm2, %v1841_v38   ;;  %2596 = vst.msk [vmem:[%s4522_s1 + $0x46] ss:$325 sm:$0x3] %vm91_vm2, %v1856_v39  }
 0x162   :  { %2597 = vst.msk [vmem:[%s4522_s1 - $0x1c4] ss:$325 sm:$0xc] %vm91_vm2, %v1856_v39  }
 0x164   :  { %v1871_v40 = vpop.permute.xlu0 %1870   ;;  %v1888_v41 = vpop.permute.xlu1 %1887  }
 0x165   :  { %2598 = vst.msk [vmem:[%s4522_s1 + $0x1c2] ss:$-325 sm:$0x3] %vm91_vm2, %v1871_v40   ;;  %2599 = vst.msk [vmem:[%s4522_s1 + $0x4cc] ss:$-325 sm:$0xc] %vm91_vm2, %v1871_v40  }
 0x166   :  { %2600 = vst.msk [vmem:[%s4522_s1 + $0x34] ss:$325 sm:$0x3] %vm91_vm2, %v1888_v41   ;;  %2601 = vst.msk [vmem:[%s4522_s1 - $0x1d6] ss:$325 sm:$0xc] %vm91_vm2, %v1888_v41  }
 0x167   :  { %2602 = vst.msk [vmem:[%s4522_s1 - $0x3e0] ss:$325 sm:$0x30] %vm91_vm2, %v1888_v41  }
 0x168   :  { %v1903_v42 = vpop.permute.xlu0 %1902  }
 0x169   :  { %2603 = vst.msk [vmem:[%s4522_s1 + $0x6b] ss:$325 sm:$0x3] %vm91_vm2, %v1903_v42   ;;  %2604 = vst.msk [vmem:[%s4522_s1 - $0x19f] ss:$325 sm:$0xc] %vm91_vm2, %v1903_v42  }
 0x16b   :  { %v1920_v43 = vpop.permute.xlu1 %1919  }
 0x16c   :  { %2605 = vst.msk [vmem:[%s4522_s1 + $0x22] ss:$325 sm:$0x3] %vm91_vm2, %v1920_v43   ;;  %2606 = vst.msk [vmem:[%s4522_s1 - $0x1e8] ss:$325 sm:$0xc] %vm91_vm2, %v1920_v43  }
 0x16d   :  { %2607 = vst.msk [vmem:[%s4522_s1 - $0x3f2] ss:$325 sm:$0x30] %vm91_vm2, %v1920_v43  }
 0x16e   :  { %v1935_v44 = vpop.permute.xlu0 %1934  }
 0x16f   :  { %2608 = vst.msk [vmem:[%s4522_s1 + $0x59] ss:$325 sm:$0x3] %vm91_vm2, %v1935_v44   ;;  %2609 = vst.msk [vmem:[%s4522_s1 - $0x1b1] ss:$325 sm:$0xc] %vm91_vm2, %v1935_v44   ;;  %v1951_v45 = vpop.permute.xlu1 %1950  }
 0x170   :  { %2610 = vst.msk [vmem:[%s4522_s1 + $0x10] ss:$325 sm:$0x3] %vm91_vm2, %v1951_v45   ;;  %2611 = vst.msk [vmem:[%s4522_s1 - $0x1fa] ss:$325 sm:$0xc] %vm91_vm2, %v1951_v45  }
 0x171   :  { %2612 = vst.msk [vmem:[%s4522_s1 - $0x404] ss:$325 sm:$0x30] %vm91_vm2, %v1951_v45  }
 0x172   :  { %v1966_v46 = vpop.permute.xlu0 %1965  }
 0x173   :  { %2613 = vst.msk [vmem:[%s4522_s1 + $0x47] ss:$325 sm:$0x3] %vm91_vm2, %v1966_v46   ;;  %2614 = vst.msk [vmem:[%s4522_s1 - $0x1c3] ss:$325 sm:$0xc] %vm91_vm2, %v1966_v46   ;;  %v1981_v47 = vpop.permute.xlu1 %1980  }
 0x174   :  { %2615 = vst.msk [vmem:[%s4522_s1 + $0x1c3] ss:$-325 sm:$0x3] %vm91_vm2, %v1981_v47   ;;  %2616 = vst.msk [vmem:[%s4522_s1 + $0x4cd] ss:$-325 sm:$0xc] %vm91_vm2, %v1981_v47  }
 0x176   :  { %v1998_v48 = vpop.permute.xlu0 %1997  }
 0x177   :  { %2617 = vst.msk [vmem:[%s4522_s1 + $0x35] ss:$325 sm:$0x3] %vm91_vm2, %v1998_v48   ;;  %2618 = vst.msk [vmem:[%s4522_s1 - $0x1d5] ss:$325 sm:$0xc] %vm91_vm2, %v1998_v48   ;;  %v2013_v49 = vpop.permute.xlu1 %2012  }
 0x178   :  { %2619 = vst.msk [vmem:[%s4522_s1 - $0x3df] ss:$325 sm:$0x30] %vm91_vm2, %v1998_v48   ;;  %2620 = vst.msk [vmem:[%s4522_s1 + $0x6c] ss:$325 sm:$0x3] %vm91_vm2, %v2013_v49  }
 0x179   :  { %2621 = vst.msk [vmem:[%s4522_s1 - $0x19e] ss:$325 sm:$0xc] %vm91_vm2, %v2013_v49  }
 0x181   :  { %v2030_v50 = vpop.permute.xlu0 %2029   ;;  %v2045_v51 = vpop.permute.xlu1 %2044  }
 0x182   :  { %2622 = vst.msk [vmem:[%s4522_s1 + $0x23] ss:$325 sm:$0x3] %vm91_vm2, %v2030_v50   ;;  %2623 = vst.msk [vmem:[%s4522_s1 - $0x1e7] ss:$325 sm:$0xc] %vm91_vm2, %v2030_v50  }
 0x183   :  { %2624 = vst.msk [vmem:[%s4522_s1 - $0x3f1] ss:$325 sm:$0x30] %vm91_vm2, %v2030_v50   ;;  %2625 = vst.msk [vmem:[%s4522_s1 + $0x5a] ss:$325 sm:$0x3] %vm91_vm2, %v2045_v51  }
 0x184   :  { %2626 = vst.msk [vmem:[%s4522_s1 - $0x1b0] ss:$325 sm:$0xc] %vm91_vm2, %v2045_v51  }
 0x185   :  { %v2061_v52 = vpop.permute.xlu0 %2060   ;;  %v2076_v53 = vpop.permute.xlu1 %2075  }
 0x186   :  { %2627 = vst.msk [vmem:[%s4522_s1 + $0x11] ss:$325 sm:$0x3] %vm91_vm2, %v2061_v52   ;;  %2628 = vst.msk [vmem:[%s4522_s1 - $0x1f9] ss:$325 sm:$0xc] %vm91_vm2, %v2061_v52  }
 0x187   :  { %2629 = vst.msk [vmem:[%s4522_s1 - $0x403] ss:$325 sm:$0x30] %vm91_vm2, %v2061_v52   ;;  %2630 = vst.msk [vmem:[%s4522_s1 + $0x48] ss:$325 sm:$0x3] %vm91_vm2, %v2076_v53  }
 0x188   :  { %2631 = vst.msk [vmem:[%s4522_s1 - $0x1c2] ss:$325 sm:$0xc] %vm91_vm2, %v2076_v53  }
 0x189   :  { %v2091_v54 = vpop.permute.xlu0 %2090  }
 0x18a   :  { %2632 = vst.msk [vmem:[%s4522_s1 + $0x1c4] ss:$-325 sm:$0x3] %vm91_vm2, %v2091_v54   ;;  %2633 = vst.msk [vmem:[%s4522_s1 + $0x4ce] ss:$-325 sm:$0xc] %vm91_vm2, %v2091_v54  }

// kernel: tile.8
= control target key start
LH: loop header
LB: loop body
LE: loop exit
PB: predicated region body
PF: predicated region fallthrough
CT: control target
= control target key end

     0   :  { %s22_s0 = inlined_call_operand.vmem [shape: f32[32], index: 0, kind: input, shape index: {}]   ;;  %s23_s1 = inlined_call_operand.vmem [shape: f32[4,32], index: 1, kind: output, shape index: {}]  }
   0x1   :  { %v4_v0 = vld [vmem:[%s22_s0] ss:$0 sm:$0xff] }
   0x2   :  { %5 = vst [vmem:[%s23_s1] sm:$0xf] %v4_v0 }

// kernel: tile.9
= control target key start
LH: loop header
LB: loop body
LE: loop exit
PB: predicated region body
PF: predicated region fallthrough
CT: control target
= control target key end

     0   :  { %vm7_vm0 = vcmask 261120   ;;  %s37_s8 = smov 32   ;;  %s38_s9 = smov 64   ;;  %vm13_vm1 = vcmask 1048320   ;;  %vm19_vm2 = vcmask 785920   ;;  %vm25_vm3 = vcmask 523520   ;;  %s55_s0 = inlined_call_operand.vmem [shape: f32[4,32], index: 0, kind: input, shape index: {}]   ;;  %s56_s1 = inlined_call_operand.vmem [shape: f32[1,128], index: 1, kind: output, shape index: {}]  }
   0x1   :  { %v4_v0 = vld [vmem:[%s55_s0] sm:$0xf]  ;;  %s36_s0 = smov 96  }
   0x2   :  { %5 = vst [vmem:[#allocation1] sm:$0xf] %v4_v0 }
   0x9   :  { %v10_v1 = vld [vmem:[#allocation1 + $0x3] sm:$0x1]   ;;  %v22_v2 = vld [vmem:[#allocation1 + $0x1] sm:$0x1]   ;;  %v6_v3 = vld [vmem:[#allocation1] sm:$0x1]  }
   0xa   :  { %11 = vrot.lane.b32.xlu0 %v10_v1, %s36_s0  ;;  %23 = vrot.lane.b32.xlu1 %v22_v2, %s37_s8  ;;  %v16_v4 = vld [vmem:[#allocation1 + $0x2] sm:$0x1]   ;;  %8 = vst.msk [vmem:[#allocation0] sm:$0x1] %vm7_vm0, %v6_v3  }
   0xe   :  { %17 = vrot.lane.b32.xlu0 %v16_v4, %s38_s9 }
  0x7c   :  { %v12_v5 = vpop.permute.xlu0 %11   ;;  %v24_v6 = vpop.permute.xlu1 %23  }
  0x7d   :  { %14 = vst.msk [vmem:[#allocation0] sm:$0x1] %vm13_vm1, %v12_v5  }
  0x80   :  { %v18_v7 = vpop.permute.xlu0 %17  }
  0x81   :  { %20 = vst.msk [vmem:[#allocation0] sm:$0x1] %vm19_vm2, %v18_v7  }
  0x82   :  { %26 = vst.msk [vmem:[#allocation0] sm:$0x1] %vm25_vm3, %v24_v6  }
  0x89   :  { %v30_v8 = vld [vmem:[#allocation0] sm:$0x1] }
  0x8a   :  { %32 = vst [vmem:[%s56_s1] sm:$0x1] %v30_v8 }

// kernel: patchify_vect.1
= control target key start
LH: loop header
LB: loop body
LE: loop exit
PB: predicated region body
PF: predicated region fallthrough
CT: control target
= control target key end

     0   :  { %s546_s12 = smov 0   ;;  %s620_s0 = inlined_call_operand.vmem [shape: f32[176,32], index: 0, kind: input, shape index: {}]   ;;  %s621_s1 = inlined_call_operand.vmem [shape: f32[32,128], index: 1, kind: input, shape index: {}]   ;;  %s622_s2 = inlined_call_operand.vmem [shape: f32[1,128], index: 2, kind: input, shape index: {}]   ;;  %s623_s3 = inlined_call_operand.vmem [shape: f32[176,128], index: 3, kind: output, shape index: {}]  }
   0x1 LB: > { %s417_s13 = sadd.s32 4294967295, %s521_s12   ;;  %p421_p0 = scmp.ge.s32.totalorder %s521_s12, 1  ;;  %s521_s12 = sphi %s546_s12, %s13_s12  }
   0x2   : > { %p138_p1 = scmp.lt.s32.totalorder %s521_s12, 3 }
   0x4   : > { %p139_p2 = pnand %p421_p0, %p138_p1 }
   0x5   : > { %v185_v0 = vld [vmem:[%s621_s1] sm:$0xff] (!%p139_p2)  ;;  %v186_v1 = vld [vmem:[%s621_s1 + $0x8] sm:$0xff] (!%p139_p2)  ;;  %v187_v2 = vld [vmem:[%s621_s1 + $0x10] sm:$0xff] (!%p139_p2)  ;;  %v523_v3 = vmov (!%p139_p2), 0.0|0.0   ;;  %s162_s22 = smul.u32 (!%p139_p2), 11, %s417_s13  ;;  %vm524_vm0 = vmmov (!%p139_p2), 0  }
   0x6   : > { %142 = sbr.rel (%p139_p2) target bundleno = 252 (0xfc), region = 32  ;;  %494 = vmatprep.subr.bf16.mxu0 (!%p139_p2), %v523_v3  ;;  %v495_v4 = vpack.c.bf16 (!%p139_p2), %v186_v1, %v185_v0  ;;  %500 = vmatprep.subr.bf16.mxu1 (!%p139_p2), %v523_v3  ;;  %v188_v5 = vld [vmem:[%s621_s1 + $0x18] sm:$0xff] (!%p139_p2)  ;;  %v525_v6 = vmov (!%p139_p2), 0.0   ;;  %vm196_vm1 = vcmask (!%p139_p2), 261120   ;;  %v424_v19 = vld [vmem:[%s622_s2] ss:$0 sm:$0xff] (!%p139_p2) }
   0x7   : > { %461 = vmatprep.mubr.msk.f32.mxu0 (!%p139_p2), %vm524_vm0, %v525_v6  ;;  %479 = vmatprep.mubr.msk.f32.mxu1 (!%p139_p2), %vm524_vm0, %v525_v6  ;;  %v498_v7 = vpack.c.bf16 (!%p139_p2), %v188_v5, %v187_v2  ;;  %p163_p3 = scmp.lt.s32.totalorder (!%p139_p2), %s162_s22, 21 }
   0x8   : > { %496 = vmatpush3.bf16.msra.mxu0 (!%p139_p2), %v495_v4  ;;  %502 = vmatpush3.bf16.msra.mxu1 (!%p139_p2), %v495_v4 }
   0x9   : > { %497 = vmatprep.subr.bf16.mxu0 (!%p139_p2), %v523_v3  ;;  %501 = vmatprep.subr.bf16.mxu1 (!%p139_p2), %v523_v3 }
   0xc   : > { %499 = vmatpush3.bf16.msra.mxu0 (!%p139_p2), %v498_v7  ;;  %503 = vmatpush3.bf16.msra.mxu1 (!%p139_p2), %v498_v7 }
   0xd   : > { %s625_s22 = smov (!%p163_p3, %s162_s22), 21 }
   0xe   : > { %s422_s23 = sshll.u32 %s625_s22, 3 }
   0xf   : > { %s166_s26 = scalar_lea.vmem %s620_s0, %s422_s23  ;;  %s604_s4 = scalar_lea.vmem %s623_s3, %s422_s23 }
  0x10   : > { %v174_v8 = vld [vmem:[%s166_s26] sm:$0xff]  ;;  %v180_v9 = vld [vmem:[%s166_s26 + $0x30] sm:$0xff]  ;;  %v175_v10 = vld [vmem:[%s166_s26 + $0x8] sm:$0xff] }
  0x11   : > { %462 = vmatmul.mubr.msk.f32.vlgmr.msra.gmra.mrb[0].mxu0 %vm196_vm1, %v174_v8  ;;  %480 = vmatmul.mubr.msk.f32.vlgmr.msra.gmra.mrb[0].mxu1 %vm196_vm1, %v180_v9  ;;  %v181_v11 = vld [vmem:[%s166_s26 + $0x38] sm:$0xff]  ;;  %v176_v12 = vld [vmem:[%s166_s26 + $0x10] sm:$0xff]  ;;  %v182_v13 = vld [vmem:[%s166_s26 + $0x40] sm:$0xff] }
  0x12   : > { %464 = vmatprep.mubr.msk.f32.mxu0 %vm524_vm0, %v525_v6  ;;  %482 = vmatprep.mubr.msk.f32.mxu1 %vm524_vm0, %v525_v6  ;;  %v177_v14 = vld [vmem:[%s166_s26 + $0x18] sm:$0xff]  ;;  %v183_v15 = vld [vmem:[%s166_s26 + $0x48] sm:$0xff]  ;;  %v178_v16 = vld [vmem:[%s166_s26 + $0x20] sm:$0xff] }
  0x13   : > { %v184_v17 = vld [vmem:[%s166_s26 + $0x50] sm:$0xff]  ;;  %v179_v18 = vld [vmem:[%s166_s26 + $0x28] sm:$0xff] }
  0x15   : > { %465 = vmatmul.mubr.msk.f32.gmra.mrb[2].mxu0 %vm196_vm1, %v175_v10  ;;  %483 = vmatmul.mubr.msk.f32.gmra.mrb[2].mxu1 %vm196_vm1, %v181_v11 }
  0x16   : > { %467 = vmatprep.mubr.msk.f32.mxu0 %vm524_vm0, %v525_v6  ;;  %485 = vmatprep.mubr.msk.f32.mxu1 %vm524_vm0, %v525_v6 }
  0x19   : > { %468 = vmatmul.mubr.msk.f32.gmra.mrb[4].mxu0 %vm196_vm1, %v176_v12  ;;  %486 = vmatmul.mubr.msk.f32.gmra.mrb[4].mxu1 %vm196_vm1, %v182_v13 }
  0x1a   : > { %470 = vmatprep.mubr.msk.f32.mxu0 %vm524_vm0, %v525_v6  ;;  %488 = vmatprep.mubr.msk.f32.mxu1 %vm524_vm0, %v525_v6 }
  0x1d   : > { %471 = vmatmul.mubr.msk.f32.gmra.mrb[6].mxu0 %vm196_vm1, %v177_v14  ;;  %489 = vmatmul.mubr.msk.f32.gmra.mrb[6].mxu1 %vm196_vm1, %v183_v15 }
  0x1e   : > { %473 = vmatprep.mubr.msk.f32.mxu0 %vm524_vm0, %v525_v6  ;;  %491 = vmatprep.mubr.msk.f32.mxu1 %vm524_vm0, %v525_v6 }
  0x21   : > { %474 = vmatmul.mubr.msk.f32.gmra.mrb[8].mxu0 %vm196_vm1, %v178_v16  ;;  %492 = vmatmul.mubr.msk.f32.gmra.mrb[8].mxu1 %vm196_vm1, %v184_v17 }
  0x22   : > { %476 = vmatprep.mubr.msk.f32.mxu0 %vm524_vm0, %v525_v6 }
  0x25   : > { %477 = vmatmul.mubr.msk.f32.gmra.mrb[10].mxu0 %vm196_vm1, %v179_v18 }
  0xe4   : > { %v296_v20 = vpop.f32.mrb[0].mxu0  ;;  %v326_v21 = vpop.f32.mrb[0].mxu1 }
  0xe5   : > { %v297_v22 = vadd.f32 %v424_v19, %v296_v20  ;;  %v463_v23 = vpop.f32.mrb[1].mxu0  ;;  %v327_v24 = vadd.f32 %v424_v19, %v326_v21  ;;  %v481_v25 = vpop.f32.mrb[1].mxu1 }
  0xe7   : > { %350 = vst [vmem:[%s604_s4] sm:$0xff] %v297_v22  ;;  %356 = vst [vmem:[%s604_s4 + $0x30] sm:$0xff] %v327_v24 }
  0xe8   : > { %v301_v26 = vpop.f32.mrb[2].mxu0  ;;  %v331_v27 = vpop.f32.mrb[2].mxu1 }
  0xe9   : > { %v302_v28 = vadd.f32 %v424_v19, %v301_v26  ;;  %v466_v29 = vpop.f32.mrb[3].mxu0  ;;  %v332_v30 = vadd.f32 %v424_v19, %v331_v27  ;;  %v484_v31 = vpop.f32.mrb[3].mxu1 }
  0xeb   : > { %351 = vst [vmem:[%s604_s4 + $0x8] sm:$0xff] %v302_v28  ;;  %357 = vst [vmem:[%s604_s4 + $0x38] sm:$0xff] %v332_v30 }
  0xec   : > { %v306_v32 = vpop.f32.mrb[4].mxu0  ;;  %v336_v33 = vpop.f32.mrb[4].mxu1 }
  0xed   : > { %v307_v34 = vadd.f32 %v424_v19, %v306_v32  ;;  %v469_v35 = vpop.f32.mrb[5].mxu0  ;;  %v337_v36 = vadd.f32 %v424_v19, %v336_v33  ;;  %v487_v37 = vpop.f32.mrb[5].mxu1 }
  0xef   : > { %352 = vst [vmem:[%s604_s4 + $0x10] sm:$0xff] %v307_v34  ;;  %358 = vst [vmem:[%s604_s4 + $0x40] sm:$0xff] %v337_v36 }
  0xf0   : > { %v311_v38 = vpop.f32.mrb[6].mxu0  ;;  %v341_v39 = vpop.f32.mrb[6].mxu1 }
  0xf1   : > { %v312_v40 = vadd.f32 %v424_v19, %v311_v38  ;;  %v472_v41 = vpop.f32.mrb[7].mxu0  ;;  %v342_v42 = vadd.f32 %v424_v19, %v341_v39  ;;  %v490_v43 = vpop.f32.mrb[7].mxu1 }
  0xf3   : > { %353 = vst [vmem:[%s604_s4 + $0x18] sm:$0xff] %v312_v40  ;;  %359 = vst [vmem:[%s604_s4 + $0x48] sm:$0xff] %v342_v42 }
  0xf4   : > { %v316_v44 = vpop.f32.mrb[8].mxu0  ;;  %v346_v45 = vpop.f32.mrb[8].mxu1 }
  0xf5   : > { %v317_v46 = vadd.f32 %v424_v19, %v316_v44  ;;  %v475_v47 = vpop.f32.mrb[9].mxu0  ;;  %v347_v48 = vadd.f32 %v424_v19, %v346_v45  ;;  %v493_v49 = vpop.f32.mrb[9].mxu1 }
  0xf7   : > { %354 = vst [vmem:[%s604_s4 + $0x20] sm:$0xff] %v317_v46  ;;  %360 = vst [vmem:[%s604_s4 + $0x50] sm:$0xff] %v347_v48 }
  0xf8   : > { %v321_v50 = vpop.f32.mrb[10].mxu0 }
  0xf9   : > { %v322_v51 = vadd.f32 %v424_v19, %v321_v50  ;;  %v478_v52 = vpop.f32.mrb[11].mxu0 }
  0xfb   : > { %355 = vst [vmem:[%s604_s4 + $0x28] sm:$0xff] %v322_v51 }
  0xfc PF: > { %s13_s12 = sadd.s32 1, %s521_s12  }
  0xfd   : > { %p10_p4 = scmp.ge.s32.totalorder %s13_s12, 4  }
  0xff   :  { %12 = sbr.rel (!%p10_p4) target bundleno = 1 (0x1), region = 62 }

</bundles_post_ra>
